<compile_context>
chip_gen: v7x
topology: tpu7x:2x2x1
jax: 0.10.0
libtpu: 0.0.40
codegen_flags: <defaults>
</compile_context>

<pallas_src>
import jax
import jax.numpy as jnp
import numpy as np
from jax.experimental import pallas as pl
from jax.experimental.pallas import tpu as pltpu


# ------------------------------- kernel --------------------------------------


def _inception_block_kernel(xpad_ref, wb0_ref, wm0_ref, wbr_ref, wmr_ref,
                            wc_ref, bias_ref, sc0w_ref, sc0b_ref,
                            sc1s_ref, sc1b_ref, out_ref, xbpad_ref, apad_ref):
    # xpad_ref : (L+2, Cin)   input, length padded by 1 row of -BIG (maxpool pad)
    # wb0_ref  : (Cin, nf)    module-0 bottleneck 1x1 conv
    # wm0_ref  : (Cin, 4nf)   module-0 maxpool-branch 1x1 conv (scale folded,
    #                         columns [0,3nf) zero)
    # wbr_ref  : (depth-1, 4nf, nf)   bottlenecks of modules 1..depth-1
    # wmr_ref  : (depth-1, 4nf, 4nf)  maxpool-branch convs of modules 1..depth-1
    # wc_ref   : (depth*kmax, nf, 4nf) merged "same"-conv taps (scale folded,
    #                         columns [3nf,4nf) zero)
    # bias_ref : (depth, 1, 4nf)  folded BatchNorm bias per module
    # sc0w_ref : (Cin, 4nf)   shortcut-0 1x1 conv (BN scale folded)
    # sc0b_ref : (1, 4nf)     shortcut-0 BN bias
    # sc1s/sc1b: (1, 4nf)     shortcut-1 BN-only scale / bias
    # out_ref  : (L, 4nf)
    # xbpad_ref: (L+2P, nf)   scratch: zero-padded bottleneck output
    # apad_ref : (L+2, 4nf)   scratch: zero-padded activation (for maxpool)
    L, nf4 = out_ref.shape
    nf = xbpad_ref.shape[1]
    P = (xbpad_ref.shape[0] - L) // 2
    depth = bias_ref.shape[0]
    kmax = wc_ref.shape[0] // depth

    # Zero only the padding rows of the scratch buffers; valid rows are fully
    # overwritten by every module.  The scratch persists across (parallel) grid
    # steps, so clear on every step (a few short rows - negligible).
    if P > 0:
        xbpad_ref[pl.ds(0, P), :] = jnp.zeros((P, nf), jnp.float32)
        xbpad_ref[pl.ds(P + L, P), :] = jnp.zeros((P, nf), jnp.float32)
    apad_ref[pl.ds(0, 1), :] = jnp.zeros((1, nf4), jnp.float32)
    apad_ref[pl.ds(L + 1, 1), :] = jnp.zeros((1, nf4), jnp.float32)

    def run_module(d, x, mp, wb, wmf):
        # x  : (L, C) module input (valid rows)
        # mp : (L, C) maxpool(3, stride=1, pad=1) of the module input
        # wb : (C, nf)  bottleneck 1x1 conv
        # wmf: (C, 4nf) maxpool-branch 1x1 conv, BN scale folded, cols [0,3nf)=0
        xb = jnp.dot(x, wb, preferred_element_type=jnp.float32)       # (L, nf)
        xbpad_ref[pl.ds(P, L), :] = xb                                 # zero-padded

        # Start from the maxpool branch + BN bias (lanes [3nf,4nf)); the merged
        # conv taps accumulate lanes [0,3nf).  Every matmul is 4nf lanes wide,
        # so there is no channel concat at all.
        acc = jnp.dot(mp, wmf, preferred_element_type=jnp.float32) + bias_ref[d]
        for t in range(kmax):                          # static unrolled taps
            off = t - kmax // 2
            acc = acc + jnp.dot(xbpad_ref[pl.ds(P + off, L), :],
                                wc_ref[d * kmax + t],
                                preferred_element_type=jnp.float32)
        return jnp.maximum(acc, 0.0)                   # folded BN + ReLU

    # ---- module 0: input arrives padded with -BIG (PyTorch maxpool -inf pad) --
    x0 = xpad_ref[pl.ds(1, L), :]                                      # (L, Cin)
    mp0 = jnp.maximum(jnp.maximum(x0, xpad_ref[pl.ds(0, L), :]),
                      xpad_ref[pl.ds(2, L), :])
    a = run_module(0, x0, mp0, wb0_ref[...], wm0_ref[...])

    res = None
    # ---- modules 1..depth-1, activations stay VMEM/vreg resident -------------
    for d in range(1, depth):
        # maxpool(3,1,1) of the previous (ReLU'd, hence >= 0) activation via the
        # zero-padded scratch: zero pad rows == -inf pad for nonnegative values.
        apad_ref[pl.ds(1, L), :] = a
        mp = jnp.maximum(jnp.maximum(a, apad_ref[pl.ds(0, L), :]),
                         apad_ref[pl.ds(2, L), :])
        a = run_module(d, a, mp, wbr_ref[d - 1], wmr_ref[d - 1])

        if d % 3 == 2:                                 # residual hookup
            if d == 2:
                # ConvBlock(ni, 4nf, 1) + BN shortcut on the block input
                # (BN scale pre-folded into the 1x1 weight columns).
                sc = jnp.dot(x0, sc0w_ref[...],
                             preferred_element_type=jnp.float32) + sc0b_ref[...]
            else:
                # BN1d-only shortcut (n_in == n_out): no identity matmul.
                sc = res * sc1s_ref[...] + sc1b_ref[...]
            a = jnp.maximum(a + sc, 0.0)
            res = a

    out_ref[...] = a.astype(out_ref.dtype)


# --------------------------- parameter folding --------------------------------


def _fold_module_weights(mod, nf, kmax):
    """Fold the BatchNorm scale into one module's conv weights and merge the
    three 'same' convs into kmax taps of shape (nf, 4nf) whose columns [0,3nf)
    carry the conv branches (smaller kernels centered in the kmax tap window);
    the maxpool-branch 1x1 conv is widened to (C, 4nf) with cols [0,3nf)=0."""
    scale = mod["scale"][0]                       # (4nf,)
    nf4 = 4 * nf
    wc = jnp.zeros((kmax, nf, nf4), jnp.float32)
    for b, w in enumerate(mod["wks"]):            # w: (k, nf, nf)
        k = w.shape[0]
        cols = slice(b * nf, (b + 1) * nf)
        t0 = kmax // 2 - k // 2
        wc = wc.at[t0:t0 + k, :, cols].set(w * scale[cols][None, None, :])
    wmf = jnp.zeros((mod["wm"].shape[0], nf4), jnp.float32)
    wmf = wmf.at[:, 3 * nf:].set(mod["wm"] * scale[3 * nf:][None, :])
    return wc, wmf


# ------------------------------ wrapper ---------------------------------------


def inception_block(x_ncl, params):
    """InceptionBlock forward.  x_ncl: (N, Cin, L) in PyTorch NCL layout."""
    N, Cin, L = x_ncl.shape
    modules, shortcuts = params["modules"], params["shortcuts"]
    depth = len(modules)
    nf = modules[0]["wb"].shape[1]
    nf4 = 4 * nf
    kmax = max(w.shape[0] for w in modules[0]["wks"])
    P = kmax // 2

    # NLC layout: channels on lanes, length on sublanes.  Pad length by one row
    # of a very negative value so the in-kernel maxpool needs no boundary masks.
    x = jnp.transpose(x_ncl, (0, 2, 1)).astype(jnp.float32)
    neg = float(np.finfo(np.float32).min)
    xpad = jnp.pad(x, ((0, 0), (1, 1), (0, 0)), constant_values=neg)

    # Fold BN scale into conv weights and merge the three convs, per module.
    wc_all, bias_all, wbr, wmr = [], [], [], []
    wb0 = wm0 = None
    for d, mod in enumerate(modules):
        wc, wmf = _fold_module_weights(mod, nf, kmax)
        wc_all.append(wc)
        bias_all.append(mod["bias"])
        if d == 0:
            wb0, wm0 = mod["wb"], wmf
        else:
            wbr.append(mod["wb"])
            wmr.append(wmf)
    wc_all = jnp.concatenate(wc_all, axis=0)          # (depth*kmax, nf, 4nf)
    bias_all = jnp.stack(bias_all, axis=0)            # (depth, 1, 4nf)
    wbr = jnp.stack(wbr, axis=0)                      # (depth-1, 4nf, nf)
    wmr = jnp.stack(wmr, axis=0)                      # (depth-1, 4nf, 4nf)

    # Shortcut 0 (after module 2): 1x1 conv + BN -> fold scale into the weight.
    sc0w = shortcuts[0]["w"] * shortcuts[0]["scale"]  # (Cin, 4nf)
    sc0b = shortcuts[0]["bias"]
    # Shortcut 1 (after module 5): BN1d only -> plain scale/bias (no matmul).
    sc1s, sc1b = shortcuts[1]["scale"], shortcuts[1]["bias"]

    def full(shape):
        return pl.BlockSpec(shape, lambda n: (0,) * len(shape))

    out = pl.pallas_call(
        _inception_block_kernel,
        out_shape=jax.ShapeDtypeStruct((N, L, nf4), jnp.float32),
        grid=(N,),
        in_specs=[
            pl.BlockSpec((pl.Squeezed(), L + 2, Cin), lambda n: (n, 0, 0)),
            full((Cin, nf)), full((Cin, nf4)),
            full((depth - 1, nf4, nf)), full((depth - 1, nf4, nf4)),
            full((depth * kmax, nf, nf4)), full((depth, 1, nf4)),
            full((Cin, nf4)), full((1, nf4)), full((1, nf4)), full((1, nf4)),
        ],
        out_specs=pl.BlockSpec((pl.Squeezed(), L, nf4), lambda n: (n, 0, 0)),
        scratch_shapes=[pltpu.VMEM((L + 2 * P, nf), jnp.float32),
                        pltpu.VMEM((L + 2, nf4), jnp.float32)],
        compiler_params=pltpu.CompilerParams(
            dimension_semantics=("parallel",)),       # keeps both v7x TCs busy
    )(xpad, wb0, wm0, wbr, wmr, wc_all, bias_all, sc0w, sc0b, sc1s, sc1b)

    return jnp.transpose(out, (0, 2, 1))              # back to NCL


# --------------------------- parameter setup ----------------------------------


def _bn_affine(key, c, eps=1e-5):
    k1, k2, k3, k4 = jax.random.split(key, 4)
    gamma = 1.0 + 0.1 * jax.random.normal(k1, (c,), jnp.float32)
    beta = 0.1 * jax.random.normal(k2, (c,), jnp.float32)
    mean = 0.1 * jax.random.normal(k3, (c,), jnp.float32)
    var = jnp.abs(1.0 + 0.1 * jax.random.normal(k4, (c,), jnp.float32))
    scale = gamma / jnp.sqrt(var + eps)
    bias = beta - mean * scale
    return scale.reshape(1, c), bias.reshape(1, c)


def _make_inception_params(key, ni, nf, ks_list):
    keys = jax.random.split(key, 6)
    wb = 0.1 * jax.random.normal(keys[0], (ni, nf), jnp.float32)
    wks = [0.1 * jax.random.normal(keys[1 + i], (k, nf, nf), jnp.float32)
           for i, k in enumerate(ks_list)]
    wm = 0.1 * jax.random.normal(keys[4], (ni, nf), jnp.float32)
    scale, bias = _bn_affine(keys[5], 4 * nf)
    return dict(wb=wb, wks=wks, wm=wm, scale=scale, bias=bias)


def make_block_params(key, ni, nf, depth, ks_list):
    keys = jax.random.split(key, depth + depth // 3)
    modules = []
    for d in range(depth):
        ni_d = ni if d == 0 else 4 * nf
        modules.append(_make_inception_params(keys[d], ni_d, nf, ks_list))
    shortcuts = []
    for s in range(depth // 3):
        d = 3 * s + 2
        n_in = ni if d == 2 else 4 * nf
        n_out = 4 * nf
        k1, k2 = jax.random.split(keys[depth + s])
        if n_in == n_out:
            w = jnp.eye(n_out, dtype=jnp.float32)      # BN1d-only shortcut
        else:
            w = 0.1 * jax.random.normal(k1, (n_in, n_out), jnp.float32)
        scale, bias = _bn_affine(k2, n_out)
        shortcuts.append(dict(w=w, scale=scale, bias=bias))
    return dict(modules=modules, shortcuts=shortcuts)


# ------------------------------ reference -------------------------------------


def _ref_inception_module(x, params):
    hp = jax.lax.Precision.HIGHEST
    xb = jnp.einsum("nlc,cf->nlf", x, params["wb"], precision=hp)
    branches = []
    for w in params["wks"]:
        branches.append(jax.lax.conv_general_dilated(
            xb, w, (1,), "SAME", dimension_numbers=("NWC", "WIO", "NWC"),
            precision=hp))
    mp = jax.lax.reduce_window(x, -jnp.inf, jax.lax.max,
                               (1, 3, 1), (1, 1, 1), ((0, 0), (1, 1), (0, 0)))
    branches.append(jnp.einsum("nlc,cf->nlf", mp, params["wm"], precision=hp))
    cat = jnp.concatenate(branches, axis=-1)
    return jnp.maximum(cat * params["scale"] + params["bias"], 0.0)


def _ref_block(x_ncl, block_params):
    hp = jax.lax.Precision.HIGHEST
    x = jnp.transpose(x_ncl, (0, 2, 1)).astype(jnp.float32)
    res = x
    for d, mp in enumerate(block_params["modules"]):
        x = _ref_inception_module(x, mp)
        if d % 3 == 2:
            sp = block_params["shortcuts"][d // 3]
            sc = jnp.einsum("nlc,cf->nlf", res, sp["w"], precision=hp)
            sc = sc * sp["scale"] + sp["bias"]
            res = x = jnp.maximum(x + sc, 0.0)
    return jnp.transpose(x, (0, 2, 1))


# --------------------------------- main ---------------------------------------


if __name__ == "__main__":
    key = jax.random.PRNGKey(0)
    N, ni, L = 2, 4, 16          # batch, input channels, sequence length
    nf, depth, ks = 8, 6, 9      # InceptionBlock(ni, nf=8, depth=6, ks=9)

    ks_list = [ks // 2 ** i for i in range(3)]
    ks_list = [k if k % 2 != 0 else k - 1 for k in ks_list]   # -> [9, 3, 1]

    kx, kp = jax.random.split(key)
    x = jax.random.normal(kx, (N, ni, L), jnp.float32)        # PyTorch NCL input
    params = make_block_params(kp, ni, nf, depth, ks_list)

    out = jax.block_until_ready(inception_block(x, params))
    assert out.shape == (N, 4 * nf, L), out.shape

    ref = _ref_block(x, params)
    np.testing.assert_allclose(np.asarray(out), np.asarray(ref),
                               rtol=2e-2, atol=2e-2)
    print("KERNEL_OK")
</pallas_src>

<mosaic_0001>
module attributes {stable_mosaic.version = 11 : i64} {
  func.func @_inception_block_kernel(%arg0: i32, %arg1: memref<1x18x4xf32, #tpu.memory_space<vmem>>, %arg2: memref<4x8xf32, #tpu.memory_space<vmem>>, %arg3: memref<4x32xf32, #tpu.memory_space<vmem>>, %arg4: memref<5x32x8xf32, #tpu.memory_space<vmem>>, %arg5: memref<5x32x32xf32, #tpu.memory_space<vmem>>, %arg6: memref<54x8x32xf32, #tpu.memory_space<vmem>>, %arg7: memref<6x1x32xf32, #tpu.memory_space<vmem>>, %arg8: memref<4x32xf32, #tpu.memory_space<vmem>>, %arg9: memref<1x32xf32, #tpu.memory_space<vmem>>, %arg10: memref<1x32xf32, #tpu.memory_space<vmem>>, %arg11: memref<1x32xf32, #tpu.memory_space<vmem>>, %arg12: memref<1x16x32xf32, #tpu.memory_space<vmem>>, %arg13: memref<24x8xf32, #tpu.memory_space<vmem>>, %arg14: memref<18x32xf32, #tpu.memory_space<vmem>>) attributes {dimension_semantics = [#tpu.dimension_semantics<parallel>], iteration_bounds = array<i64: 2>, scalar_prefetch = 0 : i64, scratch_operands = 2 : i64, tpu.core_type = #tpu.core_type<tc>, window_params = [{transform_indices = @transform_0, window_bounds = array<i64: 1, 18, 4>}, {pipeline_mode = #tpu.pipeline_mode<synchronous>, transform_indices = @transform_1, window_bounds = array<i64: 4, 8>}, {pipeline_mode = #tpu.pipeline_mode<synchronous>, transform_indices = @transform_2, window_bounds = array<i64: 4, 32>}, {pipeline_mode = #tpu.pipeline_mode<synchronous>, transform_indices = @transform_3, window_bounds = array<i64: 5, 32, 8>}, {pipeline_mode = #tpu.pipeline_mode<synchronous>, transform_indices = @transform_4, window_bounds = array<i64: 5, 32, 32>}, {pipeline_mode = #tpu.pipeline_mode<synchronous>, transform_indices = @transform_5, window_bounds = array<i64: 54, 8, 32>}, {pipeline_mode = #tpu.pipeline_mode<synchronous>, transform_indices = @transform_6, window_bounds = array<i64: 6, 1, 32>}, {pipeline_mode = #tpu.pipeline_mode<synchronous>, transform_indices = @transform_7, window_bounds = array<i64: 4, 32>}, {pipeline_mode = #tpu.pipeline_mode<synchronous>, transform_indices = @transform_8, window_bounds = array<i64: 1, 32>}, {pipeline_mode = #tpu.pipeline_mode<synchronous>, transform_indices = @transform_9, window_bounds = array<i64: 1, 32>}, {pipeline_mode = #tpu.pipeline_mode<synchronous>, transform_indices = @transform_10, window_bounds = array<i64: 1, 32>}, {transform_indices = @transform_11, window_bounds = array<i64: 1, 16, 32>}]} {
    %cst = arith.constant 0.000000e+00 : f32
    %0 = vector.broadcast %cst : f32 to vector<4x8xf32>
    %c0 = arith.constant 0 : index
    %c0_0 = arith.constant 0 : index
    %1 = vector.load %arg13[%c0, %c0_0] : memref<24x8xf32, #tpu.memory_space<vmem>>, vector<4x8xf32>
    tpu.vector_store %arg13[%c0, %c0_0], %0 {strides = array<i32>} : memref<24x8xf32, #tpu.memory_space<vmem>>, vector<4x8xf32>,
    %cst_1 = arith.constant 0.000000e+00 : f32
    %2 = vector.broadcast %cst_1 : f32 to vector<4x8xf32>
    %c20 = arith.constant 20 : index
    %c0_2 = arith.constant 0 : index
    %3 = vector.load %arg13[%c20, %c0_2] : memref<24x8xf32, #tpu.memory_space<vmem>>, vector<4x8xf32>
    tpu.vector_store %arg13[%c20, %c0_2], %2 {strides = array<i32>} : memref<24x8xf32, #tpu.memory_space<vmem>>, vector<4x8xf32>,
    %cst_3 = arith.constant 0.000000e+00 : f32
    %4 = vector.broadcast %cst_3 : f32 to vector<1x32xf32>
    %c0_4 = arith.constant 0 : index
    %c0_5 = arith.constant 0 : index
    %5 = vector.load %arg14[%c0_4, %c0_5] : memref<18x32xf32, #tpu.memory_space<vmem>>, vector<1x32xf32>
    tpu.vector_store %arg14[%c0_4, %c0_5], %4 {strides = array<i32>} : memref<18x32xf32, #tpu.memory_space<vmem>>, vector<1x32xf32>,
    %cst_6 = arith.constant 0.000000e+00 : f32
    %6 = vector.broadcast %cst_6 : f32 to vector<1x32xf32>
    %c17 = arith.constant 17 : index
    %c0_7 = arith.constant 0 : index
    %7 = vector.load %arg14[%c17, %c0_7] : memref<18x32xf32, #tpu.memory_space<vmem>>, vector<1x32xf32>
    tpu.vector_store %arg14[%c17, %c0_7], %6 {strides = array<i32>} : memref<18x32xf32, #tpu.memory_space<vmem>>, vector<1x32xf32>,
    %c0_8 = arith.constant 0 : index
    %c1 = arith.constant 1 : index
    %c0_9 = arith.constant 0 : index
    %8 = vector.load %arg1[%c0_8, %c1, %c0_9] : memref<1x18x4xf32, #tpu.memory_space<vmem>>, vector<1x16x4xf32>
    %9 = vector.shape_cast %8 : vector<1x16x4xf32> to vector<16x4xf32>
    %c0_10 = arith.constant 0 : index
    %c0_11 = arith.constant 0 : index
    %c0_12 = arith.constant 0 : index
    %10 = vector.load %arg1[%c0_10, %c0_11, %c0_12] : memref<1x18x4xf32, #tpu.memory_space<vmem>>, vector<1x16x4xf32>
    %11 = vector.shape_cast %10 : vector<1x16x4xf32> to vector<16x4xf32>
    %12 = arith.maximumf %9, %11 : vector<16x4xf32>
    %c0_13 = arith.constant 0 : index
    %c2 = arith.constant 2 : index
    %c0_14 = arith.constant 0 : index
    %13 = vector.load %arg1[%c0_13, %c2, %c0_14] : memref<1x18x4xf32, #tpu.memory_space<vmem>>, vector<1x16x4xf32>
    %14 = vector.shape_cast %13 : vector<1x16x4xf32> to vector<16x4xf32>
    %15 = arith.maximumf %12, %14 : vector<16x4xf32>
    %c0_15 = arith.constant 0 : index
    %c0_16 = arith.constant 0 : index
    %16 = vector.load %arg2[%c0_15, %c0_16] : memref<4x8xf32, #tpu.memory_space<vmem>>, vector<4x8xf32>
    %c0_17 = arith.constant 0 : index
    %c0_18 = arith.constant 0 : index
    %17 = vector.load %arg3[%c0_17, %c0_18] : memref<4x32xf32, #tpu.memory_space<vmem>>, vector<4x32xf32>
    %cst_19 = arith.constant dense<0.000000e+00> : vector<16x8xf32>
    %18 = tpu.matmul %9, %16, %cst_19 {dimension_numbers = #tpu.dot_dimension_numbers<[1], [0], [0], [1], [0, 0, 1, 1], [], []>} : vector<16x4xf32>, vector<4x8xf32>, vector<16x8xf32> -> vector<16x8xf32>
    %c4 = arith.constant 4 : index
    %c0_20 = arith.constant 0 : index
    %19 = vector.load %arg13[%c4, %c0_20] : memref<24x8xf32, #tpu.memory_space<vmem>>, vector<16x8xf32>
    tpu.vector_store %arg13[%c4, %c0_20], %18 {strides = array<i32>} : memref<24x8xf32, #tpu.memory_space<vmem>>, vector<16x8xf32>,
    %cst_21 = arith.constant dense<0.000000e+00> : vector<16x32xf32>
    %20 = tpu.matmul %15, %17, %cst_21 {dimension_numbers = #tpu.dot_dimension_numbers<[1], [0], [0], [1], [0, 0, 1, 1], [], []>} : vector<16x4xf32>, vector<4x32xf32>, vector<16x32xf32> -> vector<16x32xf32>
    %c0_22 = arith.constant 0 : index
    %c0_23 = arith.constant 0 : index
    %c0_24 = arith.constant 0 : index
    %21 = vector.load %arg7[%c0_22, %c0_23, %c0_24] : memref<6x1x32xf32, #tpu.memory_space<vmem>>, vector<1x1x32xf32>
    %22 = vector.shape_cast %21 : vector<1x1x32xf32> to vector<1x32xf32>
    %23 = vector.broadcast %22 : vector<1x32xf32> to vector<16x32xf32>
    %24 = arith.addf %20, %23 : vector<16x32xf32>
    %c0_25 = arith.constant 0 : index
    %c0_26 = arith.constant 0 : index
    %25 = vector.load %arg13[%c0_25, %c0_26] : memref<24x8xf32, #tpu.memory_space<vmem>>, vector<16x8xf32>
    %c0_27 = arith.constant 0 : index
    %c0_28 = arith.constant 0 : index
    %c0_29 = arith.constant 0 : index
    %26 = vector.load %arg6[%c0_27, %c0_28, %c0_29] : memref<54x8x32xf32, #tpu.memory_space<vmem>>, vector<1x8x32xf32>
    %27 = vector.shape_cast %26 : vector<1x8x32xf32> to vector<8x32xf32>
    %cst_30 = arith.constant dense<0.000000e+00> : vector<16x32xf32>
    %28 = tpu.matmul %25, %27, %cst_30 {dimension_numbers = #tpu.dot_dimension_numbers<[1], [0], [0], [1], [0, 0, 1, 1], [], []>} : vector<16x8xf32>, vector<8x32xf32>, vector<16x32xf32> -> vector<16x32xf32>
    %29 = arith.addf %24, %28 : vector<16x32xf32>
    %c1_31 = arith.constant 1 : index
    %c0_32 = arith.constant 0 : index
    %30 = vector.load %arg13[%c1_31, %c0_32] : memref<24x8xf32, #tpu.memory_space<vmem>>, vector<16x8xf32>
    %c1_33 = arith.constant 1 : index
    %c0_34 = arith.constant 0 : index
    %c0_35 = arith.constant 0 : index
    %31 = vector.load %arg6[%c1_33, %c0_34, %c0_35] : memref<54x8x32xf32, #tpu.memory_space<vmem>>, vector<1x8x32xf32>
    %32 = vector.shape_cast %31 : vector<1x8x32xf32> to vector<8x32xf32>
    %cst_36 = arith.constant dense<0.000000e+00> : vector<16x32xf32>
    %33 = tpu.matmul %30, %32, %cst_36 {dimension_numbers = #tpu.dot_dimension_numbers<[1], [0], [0], [1], [0, 0, 1, 1], [], []>} : vector<16x8xf32>, vector<8x32xf32>, vector<16x32xf32> -> vector<16x32xf32>
    %34 = arith.addf %29, %33 : vector<16x32xf32>
    %c2_37 = arith.constant 2 : index
    %c0_38 = arith.constant 0 : index
    %35 = vector.load %arg13[%c2_37, %c0_38] : memref<24x8xf32, #tpu.memory_space<vmem>>, vector<16x8xf32>
    %c2_39 = arith.constant 2 : index
    %c0_40 = arith.constant 0 : index
    %c0_41 = arith.constant 0 : index
    %36 = vector.load %arg6[%c2_39, %c0_40, %c0_41] : memref<54x8x32xf32, #tpu.memory_space<vmem>>, vector<1x8x32xf32>
    %37 = vector.shape_cast %36 : vector<1x8x32xf32> to vector<8x32xf32>
    %cst_42 = arith.constant dense<0.000000e+00> : vector<16x32xf32>
    %38 = tpu.matmul %35, %37, %cst_42 {dimension_numbers = #tpu.dot_dimension_numbers<[1], [0], [0], [1], [0, 0, 1, 1], [], []>} : vector<16x8xf32>, vector<8x32xf32>, vector<16x32xf32> -> vector<16x32xf32>
    %39 = arith.addf %34, %38 : vector<16x32xf32>
    %c3 = arith.constant 3 : index
    %c0_43 = arith.constant 0 : index
    %40 = vector.load %arg13[%c3, %c0_43] : memref<24x8xf32, #tpu.memory_space<vmem>>, vector<16x8xf32>
    %c3_44 = arith.constant 3 : index
    %c0_45 = arith.constant 0 : index
    %c0_46 = arith.constant 0 : index
    %41 = vector.load %arg6[%c3_44, %c0_45, %c0_46] : memref<54x8x32xf32, #tpu.memory_space<vmem>>, vector<1x8x32xf32>
    %42 = vector.shape_cast %41 : vector<1x8x32xf32> to vector<8x32xf32>
    %cst_47 = arith.constant dense<0.000000e+00> : vector<16x32xf32>
    %43 = tpu.matmul %40, %42, %cst_47 {dimension_numbers = #tpu.dot_dimension_numbers<[1], [0], [0], [1], [0, 0, 1, 1], [], []>} : vector<16x8xf32>, vector<8x32xf32>, vector<16x32xf32> -> vector<16x32xf32>
    %44 = arith.addf %39, %43 : vector<16x32xf32>
    %c4_48 = arith.constant 4 : index
    %c0_49 = arith.constant 0 : index
    %45 = vector.load %arg13[%c4_48, %c0_49] : memref<24x8xf32, #tpu.memory_space<vmem>>, vector<16x8xf32>
    %c4_50 = arith.constant 4 : index
    %c0_51 = arith.constant 0 : index
    %c0_52 = arith.constant 0 : index
    %46 = vector.load %arg6[%c4_50, %c0_51, %c0_52] : memref<54x8x32xf32, #tpu.memory_space<vmem>>, vector<1x8x32xf32>
    %47 = vector.shape_cast %46 : vector<1x8x32xf32> to vector<8x32xf32>
    %cst_53 = arith.constant dense<0.000000e+00> : vector<16x32xf32>
    %48 = tpu.matmul %45, %47, %cst_53 {dimension_numbers = #tpu.dot_dimension_numbers<[1], [0], [0], [1], [0, 0, 1, 1], [], []>} : vector<16x8xf32>, vector<8x32xf32>, vector<16x32xf32> -> vector<16x32xf32>
    %49 = arith.addf %44, %48 : vector<16x32xf32>
    %c5 = arith.constant 5 : index
    %c0_54 = arith.constant 0 : index
    %50 = vector.load %arg13[%c5, %c0_54] : memref<24x8xf32, #tpu.memory_space<vmem>>, vector<16x8xf32>
    %c5_55 = arith.constant 5 : index
    %c0_56 = arith.constant 0 : index
    %c0_57 = arith.constant 0 : index
    %51 = vector.load %arg6[%c5_55, %c0_56, %c0_57] : memref<54x8x32xf32, #tpu.memory_space<vmem>>, vector<1x8x32xf32>
    %52 = vector.shape_cast %51 : vector<1x8x32xf32> to vector<8x32xf32>
    %cst_58 = arith.constant dense<0.000000e+00> : vector<16x32xf32>
    %53 = tpu.matmul %50, %52, %cst_58 {dimension_numbers = #tpu.dot_dimension_numbers<[1], [0], [0], [1], [0, 0, 1, 1], [], []>} : vector<16x8xf32>, vector<8x32xf32>, vector<16x32xf32> -> vector<16x32xf32>
    %54 = arith.addf %49, %53 : vector<16x32xf32>
    %c6 = arith.constant 6 : index
    %c0_59 = arith.constant 0 : index
    %55 = vector.load %arg13[%c6, %c0_59] : memref<24x8xf32, #tpu.memory_space<vmem>>, vector<16x8xf32>
    %c6_60 = arith.constant 6 : index
    %c0_61 = arith.constant 0 : index
    %c0_62 = arith.constant 0 : index
    %56 = vector.load %arg6[%c6_60, %c0_61, %c0_62] : memref<54x8x32xf32, #tpu.memory_space<vmem>>, vector<1x8x32xf32>
    %57 = vector.shape_cast %56 : vector<1x8x32xf32> to vector<8x32xf32>
    %cst_63 = arith.constant dense<0.000000e+00> : vector<16x32xf32>
    %58 = tpu.matmul %55, %57, %cst_63 {dimension_numbers = #tpu.dot_dimension_numbers<[1], [0], [0], [1], [0, 0, 1, 1], [], []>} : vector<16x8xf32>, vector<8x32xf32>, vector<16x32xf32> -> vector<16x32xf32>
    %59 = arith.addf %54, %58 : vector<16x32xf32>
    %c7 = arith.constant 7 : index
    %c0_64 = arith.constant 0 : index
    %60 = vector.load %arg13[%c7, %c0_64] : memref<24x8xf32, #tpu.memory_space<vmem>>, vector<16x8xf32>
    %c7_65 = arith.constant 7 : index
    %c0_66 = arith.constant 0 : index
    %c0_67 = arith.constant 0 : index
    %61 = vector.load %arg6[%c7_65, %c0_66, %c0_67] : memref<54x8x32xf32, #tpu.memory_space<vmem>>, vector<1x8x32xf32>
    %62 = vector.shape_cast %61 : vector<1x8x32xf32> to vector<8x32xf32>
    %cst_68 = arith.constant dense<0.000000e+00> : vector<16x32xf32>
    %63 = tpu.matmul %60, %62, %cst_68 {dimension_numbers = #tpu.dot_dimension_numbers<[1], [0], [0], [1], [0, 0, 1, 1], [], []>} : vector<16x8xf32>, vector<8x32xf32>, vector<16x32xf32> -> vector<16x32xf32>
    %64 = arith.addf %59, %63 : vector<16x32xf32>
    %c8 = arith.constant 8 : index
    %c0_69 = arith.constant 0 : index
    %65 = vector.load %arg13[%c8, %c0_69] : memref<24x8xf32, #tpu.memory_space<vmem>>, vector<16x8xf32>
    %c8_70 = arith.constant 8 : index
    %c0_71 = arith.constant 0 : index
    %c0_72 = arith.constant 0 : index
    %66 = vector.load %arg6[%c8_70, %c0_71, %c0_72] : memref<54x8x32xf32, #tpu.memory_space<vmem>>, vector<1x8x32xf32>
    %67 = vector.shape_cast %66 : vector<1x8x32xf32> to vector<8x32xf32>
    %cst_73 = arith.constant dense<0.000000e+00> : vector<16x32xf32>
    %68 = tpu.matmul %65, %67, %cst_73 {dimension_numbers = #tpu.dot_dimension_numbers<[1], [0], [0], [1], [0, 0, 1, 1], [], []>} : vector<16x8xf32>, vector<8x32xf32>, vector<16x32xf32> -> vector<16x32xf32>
    %69 = arith.addf %64, %68 : vector<16x32xf32>
    %cst_74 = arith.constant 0.000000e+00 : f32
    %70 = vector.broadcast %cst_74 : f32 to vector<16x32xf32>
    %71 = arith.maximumf %69, %70 : vector<16x32xf32>
    %c1_75 = arith.constant 1 : index
    %c0_76 = arith.constant 0 : index
    %72 = vector.load %arg14[%c1_75, %c0_76] : memref<18x32xf32, #tpu.memory_space<vmem>>, vector<16x32xf32>
    tpu.vector_store %arg14[%c1_75, %c0_76], %71 {strides = array<i32>} : memref<18x32xf32, #tpu.memory_space<vmem>>, vector<16x32xf32>,
    %c0_77 = arith.constant 0 : index
    %c0_78 = arith.constant 0 : index
    %73 = vector.load %arg14[%c0_77, %c0_78] : memref<18x32xf32, #tpu.memory_space<vmem>>, vector<16x32xf32>
    %74 = arith.maximumf %71, %73 : vector<16x32xf32>
    %c2_79 = arith.constant 2 : index
    %c0_80 = arith.constant 0 : index
    %75 = vector.load %arg14[%c2_79, %c0_80] : memref<18x32xf32, #tpu.memory_space<vmem>>, vector<16x32xf32>
    %76 = arith.maximumf %74, %75 : vector<16x32xf32>
    %c0_81 = arith.constant 0 : index
    %c0_82 = arith.constant 0 : index
    %c0_83 = arith.constant 0 : index
    %77 = vector.load %arg4[%c0_81, %c0_82, %c0_83] : memref<5x32x8xf32, #tpu.memory_space<vmem>>, vector<1x32x8xf32>
    %78 = vector.shape_cast %77 : vector<1x32x8xf32> to vector<32x8xf32>
    %c0_84 = arith.constant 0 : index
    %c0_85 = arith.constant 0 : index
    %c0_86 = arith.constant 0 : index
    %79 = vector.load %arg5[%c0_84, %c0_85, %c0_86] : memref<5x32x32xf32, #tpu.memory_space<vmem>>, vector<1x32x32xf32>
    %80 = vector.shape_cast %79 : vector<1x32x32xf32> to vector<32x32xf32>
    %cst_87 = arith.constant dense<0.000000e+00> : vector<16x8xf32>
    %81 = tpu.matmul %71, %78, %cst_87 {dimension_numbers = #tpu.dot_dimension_numbers<[1], [0], [0], [1], [0, 0, 1, 1], [], []>} : vector<16x32xf32>, vector<32x8xf32>, vector<16x8xf32> -> vector<16x8xf32>
    %c4_88 = arith.constant 4 : index
    %c0_89 = arith.constant 0 : index
    %82 = vector.load %arg13[%c4_88, %c0_89] : memref<24x8xf32, #tpu.memory_space<vmem>>, vector<16x8xf32>
    tpu.vector_store %arg13[%c4_88, %c0_89], %81 {strides = array<i32>} : memref<24x8xf32, #tpu.memory_space<vmem>>, vector<16x8xf32>,
    %cst_90 = arith.constant dense<0.000000e+00> : vector<16x32xf32>
    %83 = tpu.matmul %76, %80, %cst_90 {dimension_numbers = #tpu.dot_dimension_numbers<[1], [0], [0], [1], [0, 0, 1, 1], [], []>} : vector<16x32xf32>, vector<32x32xf32>, vector<16x32xf32> -> vector<16x32xf32>
    %c1_91 = arith.constant 1 : index
    %c0_92 = arith.constant 0 : index
    %c0_93 = arith.constant 0 : index
    %84 = vector.load %arg7[%c1_91, %c0_92, %c0_93] : memref<6x1x32xf32, #tpu.memory_space<vmem>>, vector<1x1x32xf32>
    %85 = vector.shape_cast %84 : vector<1x1x32xf32> to vector<1x32xf32>
    %86 = vector.broadcast %85 : vector<1x32xf32> to vector<16x32xf32>
    %87 = arith.addf %83, %86 : vector<16x32xf32>
    %c0_94 = arith.constant 0 : index
    %c0_95 = arith.constant 0 : index
    %88 = vector.load %arg13[%c0_94, %c0_95] : memref<24x8xf32, #tpu.memory_space<vmem>>, vector<16x8xf32>
    %c9 = arith.constant 9 : index
    %c0_96 = arith.constant 0 : index
    %c0_97 = arith.constant 0 : index
    %89 = vector.load %arg6[%c9, %c0_96, %c0_97] : memref<54x8x32xf32, #tpu.memory_space<vmem>>, vector<1x8x32xf32>
    %90 = vector.shape_cast %89 : vector<1x8x32xf32> to vector<8x32xf32>
    %cst_98 = arith.constant dense<0.000000e+00> : vector<16x32xf32>
    %91 = tpu.matmul %88, %90, %cst_98 {dimension_numbers = #tpu.dot_dimension_numbers<[1], [0], [0], [1], [0, 0, 1, 1], [], []>} : vector<16x8xf32>, vector<8x32xf32>, vector<16x32xf32> -> vector<16x32xf32>
    %92 = arith.addf %87, %91 : vector<16x32xf32>
    %c1_99 = arith.constant 1 : index
    %c0_100 = arith.constant 0 : index
    %93 = vector.load %arg13[%c1_99, %c0_100] : memref<24x8xf32, #tpu.memory_space<vmem>>, vector<16x8xf32>
    %c10 = arith.constant 10 : index
    %c0_101 = arith.constant 0 : index
    %c0_102 = arith.constant 0 : index
    %94 = vector.load %arg6[%c10, %c0_101, %c0_102] : memref<54x8x32xf32, #tpu.memory_space<vmem>>, vector<1x8x32xf32>
    %95 = vector.shape_cast %94 : vector<1x8x32xf32> to vector<8x32xf32>
    %cst_103 = arith.constant dense<0.000000e+00> : vector<16x32xf32>
    %96 = tpu.matmul %93, %95, %cst_103 {dimension_numbers = #tpu.dot_dimension_numbers<[1], [0], [0], [1], [0, 0, 1, 1], [], []>} : vector<16x8xf32>, vector<8x32xf32>, vector<16x32xf32> -> vector<16x32xf32>
    %97 = arith.addf %92, %96 : vector<16x32xf32>
    %c2_104 = arith.constant 2 : index
    %c0_105 = arith.constant 0 : index
    %98 = vector.load %arg13[%c2_104, %c0_105] : memref<24x8xf32, #tpu.memory_space<vmem>>, vector<16x8xf32>
    %c11 = arith.constant 11 : index
    %c0_106 = arith.constant 0 : index
    %c0_107 = arith.constant 0 : index
    %99 = vector.load %arg6[%c11, %c0_106, %c0_107] : memref<54x8x32xf32, #tpu.memory_space<vmem>>, vector<1x8x32xf32>
    %100 = vector.shape_cast %99 : vector<1x8x32xf32> to vector<8x32xf32>
    %cst_108 = arith.constant dense<0.000000e+00> : vector<16x32xf32>
    %101 = tpu.matmul %98, %100, %cst_108 {dimension_numbers = #tpu.dot_dimension_numbers<[1], [0], [0], [1], [0, 0, 1, 1], [], []>} : vector<16x8xf32>, vector<8x32xf32>, vector<16x32xf32> -> vector<16x32xf32>
    %102 = arith.addf %97, %101 : vector<16x32xf32>
    %c3_109 = arith.constant 3 : index
    %c0_110 = arith.constant 0 : index
    %103 = vector.load %arg13[%c3_109, %c0_110] : memref<24x8xf32, #tpu.memory_space<vmem>>, vector<16x8xf32>
    %c12 = arith.constant 12 : index
    %c0_111 = arith.constant 0 : index
    %c0_112 = arith.constant 0 : index
    %104 = vector.load %arg6[%c12, %c0_111, %c0_112] : memref<54x8x32xf32, #tpu.memory_space<vmem>>, vector<1x8x32xf32>
    %105 = vector.shape_cast %104 : vector<1x8x32xf32> to vector<8x32xf32>
    %cst_113 = arith.constant dense<0.000000e+00> : vector<16x32xf32>
    %106 = tpu.matmul %103, %105, %cst_113 {dimension_numbers = #tpu.dot_dimension_numbers<[1], [0], [0], [1], [0, 0, 1, 1], [], []>} : vector<16x8xf32>, vector<8x32xf32>, vector<16x32xf32> -> vector<16x32xf32>
    %107 = arith.addf %102, %106 : vector<16x32xf32>
    %c4_114 = arith.constant 4 : index
    %c0_115 = arith.constant 0 : index
    %108 = vector.load %arg13[%c4_114, %c0_115] : memref<24x8xf32, #tpu.memory_space<vmem>>, vector<16x8xf32>
    %c13 = arith.constant 13 : index
    %c0_116 = arith.constant 0 : index
    %c0_117 = arith.constant 0 : index
    %109 = vector.load %arg6[%c13, %c0_116, %c0_117] : memref<54x8x32xf32, #tpu.memory_space<vmem>>, vector<1x8x32xf32>
    %110 = vector.shape_cast %109 : vector<1x8x32xf32> to vector<8x32xf32>
    %cst_118 = arith.constant dense<0.000000e+00> : vector<16x32xf32>
    %111 = tpu.matmul %108, %110, %cst_118 {dimension_numbers = #tpu.dot_dimension_numbers<[1], [0], [0], [1], [0, 0, 1, 1], [], []>} : vector<16x8xf32>, vector<8x32xf32>, vector<16x32xf32> -> vector<16x32xf32>
    %112 = arith.addf %107, %111 : vector<16x32xf32>
    %c5_119 = arith.constant 5 : index
    %c0_120 = arith.constant 0 : index
    %113 = vector.load %arg13[%c5_119, %c0_120] : memref<24x8xf32, #tpu.memory_space<vmem>>, vector<16x8xf32>
    %c14 = arith.constant 14 : index
    %c0_121 = arith.constant 0 : index
    %c0_122 = arith.constant 0 : index
    %114 = vector.load %arg6[%c14, %c0_121, %c0_122] : memref<54x8x32xf32, #tpu.memory_space<vmem>>, vector<1x8x32xf32>
    %115 = vector.shape_cast %114 : vector<1x8x32xf32> to vector<8x32xf32>
    %cst_123 = arith.constant dense<0.000000e+00> : vector<16x32xf32>
    %116 = tpu.matmul %113, %115, %cst_123 {dimension_numbers = #tpu.dot_dimension_numbers<[1], [0], [0], [1], [0, 0, 1, 1], [], []>} : vector<16x8xf32>, vector<8x32xf32>, vector<16x32xf32> -> vector<16x32xf32>
    %117 = arith.addf %112, %116 : vector<16x32xf32>
    %c6_124 = arith.constant 6 : index
    %c0_125 = arith.constant 0 : index
    %118 = vector.load %arg13[%c6_124, %c0_125] : memref<24x8xf32, #tpu.memory_space<vmem>>, vector<16x8xf32>
    %c15 = arith.constant 15 : index
    %c0_126 = arith.constant 0 : index
    %c0_127 = arith.constant 0 : index
    %119 = vector.load %arg6[%c15, %c0_126, %c0_127] : memref<54x8x32xf32, #tpu.memory_space<vmem>>, vector<1x8x32xf32>
    %120 = vector.shape_cast %119 : vector<1x8x32xf32> to vector<8x32xf32>
    %cst_128 = arith.constant dense<0.000000e+00> : vector<16x32xf32>
    %121 = tpu.matmul %118, %120, %cst_128 {dimension_numbers = #tpu.dot_dimension_numbers<[1], [0], [0], [1], [0, 0, 1, 1], [], []>} : vector<16x8xf32>, vector<8x32xf32>, vector<16x32xf32> -> vector<16x32xf32>
    %122 = arith.addf %117, %121 : vector<16x32xf32>
    %c7_129 = arith.constant 7 : index
    %c0_130 = arith.constant 0 : index
    %123 = vector.load %arg13[%c7_129, %c0_130] : memref<24x8xf32, #tpu.memory_space<vmem>>, vector<16x8xf32>
    %c16 = arith.constant 16 : index
    %c0_131 = arith.constant 0 : index
    %c0_132 = arith.constant 0 : index
    %124 = vector.load %arg6[%c16, %c0_131, %c0_132] : memref<54x8x32xf32, #tpu.memory_space<vmem>>, vector<1x8x32xf32>
    %125 = vector.shape_cast %124 : vector<1x8x32xf32> to vector<8x32xf32>
    %cst_133 = arith.constant dense<0.000000e+00> : vector<16x32xf32>
    %126 = tpu.matmul %123, %125, %cst_133 {dimension_numbers = #tpu.dot_dimension_numbers<[1], [0], [0], [1], [0, 0, 1, 1], [], []>} : vector<16x8xf32>, vector<8x32xf32>, vector<16x32xf32> -> vector<16x32xf32>
    %127 = arith.addf %122, %126 : vector<16x32xf32>
    %c8_134 = arith.constant 8 : index
    %c0_135 = arith.constant 0 : index
    %128 = vector.load %arg13[%c8_134, %c0_135] : memref<24x8xf32, #tpu.memory_space<vmem>>, vector<16x8xf32>
    %c17_136 = arith.constant 17 : index
    %c0_137 = arith.constant 0 : index
    %c0_138 = arith.constant 0 : index
    %129 = vector.load %arg6[%c17_136, %c0_137, %c0_138] : memref<54x8x32xf32, #tpu.memory_space<vmem>>, vector<1x8x32xf32>
    %130 = vector.shape_cast %129 : vector<1x8x32xf32> to vector<8x32xf32>
    %cst_139 = arith.constant dense<0.000000e+00> : vector<16x32xf32>
    %131 = tpu.matmul %128, %130, %cst_139 {dimension_numbers = #tpu.dot_dimension_numbers<[1], [0], [0], [1], [0, 0, 1, 1], [], []>} : vector<16x8xf32>, vector<8x32xf32>, vector<16x32xf32> -> vector<16x32xf32>
    %132 = arith.addf %127, %131 : vector<16x32xf32>
    %cst_140 = arith.constant 0.000000e+00 : f32
    %133 = vector.broadcast %cst_140 : f32 to vector<16x32xf32>
    %134 = arith.maximumf %132, %133 : vector<16x32xf32>
    %c1_141 = arith.constant 1 : index
    %c0_142 = arith.constant 0 : index
    %135 = vector.load %arg14[%c1_141, %c0_142] : memref<18x32xf32, #tpu.memory_space<vmem>>, vector<16x32xf32>
    tpu.vector_store %arg14[%c1_141, %c0_142], %134 {strides = array<i32>} : memref<18x32xf32, #tpu.memory_space<vmem>>, vector<16x32xf32>,
    %c0_143 = arith.constant 0 : index
    %c0_144 = arith.constant 0 : index
    %136 = vector.load %arg14[%c0_143, %c0_144] : memref<18x32xf32, #tpu.memory_space<vmem>>, vector<16x32xf32>
    %137 = arith.maximumf %134, %136 : vector<16x32xf32>
    %c2_145 = arith.constant 2 : index
    %c0_146 = arith.constant 0 : index
    %138 = vector.load %arg14[%c2_145, %c0_146] : memref<18x32xf32, #tpu.memory_space<vmem>>, vector<16x32xf32>
    %139 = arith.maximumf %137, %138 : vector<16x32xf32>
    %c1_147 = arith.constant 1 : index
    %c0_148 = arith.constant 0 : index
    %c0_149 = arith.constant 0 : index
    %140 = vector.load %arg4[%c1_147, %c0_148, %c0_149] : memref<5x32x8xf32, #tpu.memory_space<vmem>>, vector<1x32x8xf32>
    %141 = vector.shape_cast %140 : vector<1x32x8xf32> to vector<32x8xf32>
    %c1_150 = arith.constant 1 : index
    %c0_151 = arith.constant 0 : index
    %c0_152 = arith.constant 0 : index
    %142 = vector.load %arg5[%c1_150, %c0_151, %c0_152] : memref<5x32x32xf32, #tpu.memory_space<vmem>>, vector<1x32x32xf32>
    %143 = vector.shape_cast %142 : vector<1x32x32xf32> to vector<32x32xf32>
    %cst_153 = arith.constant dense<0.000000e+00> : vector<16x8xf32>
    %144 = tpu.matmul %134, %141, %cst_153 {dimension_numbers = #tpu.dot_dimension_numbers<[1], [0], [0], [1], [0, 0, 1, 1], [], []>} : vector<16x32xf32>, vector<32x8xf32>, vector<16x8xf32> -> vector<16x8xf32>
    %c4_154 = arith.constant 4 : index
    %c0_155 = arith.constant 0 : index
    %145 = vector.load %arg13[%c4_154, %c0_155] : memref<24x8xf32, #tpu.memory_space<vmem>>, vector<16x8xf32>
    tpu.vector_store %arg13[%c4_154, %c0_155], %144 {strides = array<i32>} : memref<24x8xf32, #tpu.memory_space<vmem>>, vector<16x8xf32>,
    %cst_156 = arith.constant dense<0.000000e+00> : vector<16x32xf32>
    %146 = tpu.matmul %139, %143, %cst_156 {dimension_numbers = #tpu.dot_dimension_numbers<[1], [0], [0], [1], [0, 0, 1, 1], [], []>} : vector<16x32xf32>, vector<32x32xf32>, vector<16x32xf32> -> vector<16x32xf32>
    %c2_157 = arith.constant 2 : index
    %c0_158 = arith.constant 0 : index
    %c0_159 = arith.constant 0 : index
    %147 = vector.load %arg7[%c2_157, %c0_158, %c0_159] : memref<6x1x32xf32, #tpu.memory_space<vmem>>, vector<1x1x32xf32>
    %148 = vector.shape_cast %147 : vector<1x1x32xf32> to vector<1x32xf32>
    %149 = vector.broadcast %148 : vector<1x32xf32> to vector<16x32xf32>
    %150 = arith.addf %146, %149 : vector<16x32xf32>
    %c0_160 = arith.constant 0 : index
    %c0_161 = arith.constant 0 : index
    %151 = vector.load %arg13[%c0_160, %c0_161] : memref<24x8xf32, #tpu.memory_space<vmem>>, vector<16x8xf32>
    %c18 = arith.constant 18 : index
    %c0_162 = arith.constant 0 : index
    %c0_163 = arith.constant 0 : index
    %152 = vector.load %arg6[%c18, %c0_162, %c0_163] : memref<54x8x32xf32, #tpu.memory_space<vmem>>, vector<1x8x32xf32>
    %153 = vector.shape_cast %152 : vector<1x8x32xf32> to vector<8x32xf32>
    %cst_164 = arith.constant dense<0.000000e+00> : vector<16x32xf32>
    %154 = tpu.matmul %151, %153, %cst_164 {dimension_numbers = #tpu.dot_dimension_numbers<[1], [0], [0], [1], [0, 0, 1, 1], [], []>} : vector<16x8xf32>, vector<8x32xf32>, vector<16x32xf32> -> vector<16x32xf32>
    %155 = arith.addf %150, %154 : vector<16x32xf32>
    %c1_165 = arith.constant 1 : index
    %c0_166 = arith.constant 0 : index
    %156 = vector.load %arg13[%c1_165, %c0_166] : memref<24x8xf32, #tpu.memory_space<vmem>>, vector<16x8xf32>
    %c19 = arith.constant 19 : index
    %c0_167 = arith.constant 0 : index
    %c0_168 = arith.constant 0 : index
    %157 = vector.load %arg6[%c19, %c0_167, %c0_168] : memref<54x8x32xf32, #tpu.memory_space<vmem>>, vector<1x8x32xf32>
    %158 = vector.shape_cast %157 : vector<1x8x32xf32> to vector<8x32xf32>
    %cst_169 = arith.constant dense<0.000000e+00> : vector<16x32xf32>
    %159 = tpu.matmul %156, %158, %cst_169 {dimension_numbers = #tpu.dot_dimension_numbers<[1], [0], [0], [1], [0, 0, 1, 1], [], []>} : vector<16x8xf32>, vector<8x32xf32>, vector<16x32xf32> -> vector<16x32xf32>
    %160 = arith.addf %155, %159 : vector<16x32xf32>
    %c2_170 = arith.constant 2 : index
    %c0_171 = arith.constant 0 : index
    %161 = vector.load %arg13[%c2_170, %c0_171] : memref<24x8xf32, #tpu.memory_space<vmem>>, vector<16x8xf32>
    %c20_172 = arith.constant 20 : index
    %c0_173 = arith.constant 0 : index
    %c0_174 = arith.constant 0 : index
    %162 = vector.load %arg6[%c20_172, %c0_173, %c0_174] : memref<54x8x32xf32, #tpu.memory_space<vmem>>, vector<1x8x32xf32>
    %163 = vector.shape_cast %162 : vector<1x8x32xf32> to vector<8x32xf32>
    %cst_175 = arith.constant dense<0.000000e+00> : vector<16x32xf32>
    %164 = tpu.matmul %161, %163, %cst_175 {dimension_numbers = #tpu.dot_dimension_numbers<[1], [0], [0], [1], [0, 0, 1, 1], [], []>} : vector<16x8xf32>, vector<8x32xf32>, vector<16x32xf32> -> vector<16x32xf32>
    %165 = arith.addf %160, %164 : vector<16x32xf32>
    %c3_176 = arith.constant 3 : index
    %c0_177 = arith.constant 0 : index
    %166 = vector.load %arg13[%c3_176, %c0_177] : memref<24x8xf32, #tpu.memory_space<vmem>>, vector<16x8xf32>
    %c21 = arith.constant 21 : index
    %c0_178 = arith.constant 0 : index
    %c0_179 = arith.constant 0 : index
    %167 = vector.load %arg6[%c21, %c0_178, %c0_179] : memref<54x8x32xf32, #tpu.memory_space<vmem>>, vector<1x8x32xf32>
    %168 = vector.shape_cast %167 : vector<1x8x32xf32> to vector<8x32xf32>
    %cst_180 = arith.constant dense<0.000000e+00> : vector<16x32xf32>
    %169 = tpu.matmul %166, %168, %cst_180 {dimension_numbers = #tpu.dot_dimension_numbers<[1], [0], [0], [1], [0, 0, 1, 1], [], []>} : vector<16x8xf32>, vector<8x32xf32>, vector<16x32xf32> -> vector<16x32xf32>
    %170 = arith.addf %165, %169 : vector<16x32xf32>
    %c4_181 = arith.constant 4 : index
    %c0_182 = arith.constant 0 : index
    %171 = vector.load %arg13[%c4_181, %c0_182] : memref<24x8xf32, #tpu.memory_space<vmem>>, vector<16x8xf32>
    %c22 = arith.constant 22 : index
    %c0_183 = arith.constant 0 : index
    %c0_184 = arith.constant 0 : index
    %172 = vector.load %arg6[%c22, %c0_183, %c0_184] : memref<54x8x32xf32, #tpu.memory_space<vmem>>, vector<1x8x32xf32>
    %173 = vector.shape_cast %172 : vector<1x8x32xf32> to vector<8x32xf32>
    %cst_185 = arith.constant dense<0.000000e+00> : vector<16x32xf32>
    %174 = tpu.matmul %171, %173, %cst_185 {dimension_numbers = #tpu.dot_dimension_numbers<[1], [0], [0], [1], [0, 0, 1, 1], [], []>} : vector<16x8xf32>, vector<8x32xf32>, vector<16x32xf32> -> vector<16x32xf32>
    %175 = arith.addf %170, %174 : vector<16x32xf32>
    %c5_186 = arith.constant 5 : index
    %c0_187 = arith.constant 0 : index
    %176 = vector.load %arg13[%c5_186, %c0_187] : memref<24x8xf32, #tpu.memory_space<vmem>>, vector<16x8xf32>
    %c23 = arith.constant 23 : index
    %c0_188 = arith.constant 0 : index
    %c0_189 = arith.constant 0 : index
    %177 = vector.load %arg6[%c23, %c0_188, %c0_189] : memref<54x8x32xf32, #tpu.memory_space<vmem>>, vector<1x8x32xf32>
    %178 = vector.shape_cast %177 : vector<1x8x32xf32> to vector<8x32xf32>
    %cst_190 = arith.constant dense<0.000000e+00> : vector<16x32xf32>
    %179 = tpu.matmul %176, %178, %cst_190 {dimension_numbers = #tpu.dot_dimension_numbers<[1], [0], [0], [1], [0, 0, 1, 1], [], []>} : vector<16x8xf32>, vector<8x32xf32>, vector<16x32xf32> -> vector<16x32xf32>
    %180 = arith.addf %175, %179 : vector<16x32xf32>
    %c6_191 = arith.constant 6 : index
    %c0_192 = arith.constant 0 : index
    %181 = vector.load %arg13[%c6_191, %c0_192] : memref<24x8xf32, #tpu.memory_space<vmem>>, vector<16x8xf32>
    %c24 = arith.constant 24 : index
    %c0_193 = arith.constant 0 : index
    %c0_194 = arith.constant 0 : index
    %182 = vector.load %arg6[%c24, %c0_193, %c0_194] : memref<54x8x32xf32, #tpu.memory_space<vmem>>, vector<1x8x32xf32>
    %183 = vector.shape_cast %182 : vector<1x8x32xf32> to vector<8x32xf32>
    %cst_195 = arith.constant dense<0.000000e+00> : vector<16x32xf32>
    %184 = tpu.matmul %181, %183, %cst_195 {dimension_numbers = #tpu.dot_dimension_numbers<[1], [0], [0], [1], [0, 0, 1, 1], [], []>} : vector<16x8xf32>, vector<8x32xf32>, vector<16x32xf32> -> vector<16x32xf32>
    %185 = arith.addf %180, %184 : vector<16x32xf32>
    %c7_196 = arith.constant 7 : index
    %c0_197 = arith.constant 0 : index
    %186 = vector.load %arg13[%c7_196, %c0_197] : memref<24x8xf32, #tpu.memory_space<vmem>>, vector<16x8xf32>
    %c25 = arith.constant 25 : index
    %c0_198 = arith.constant 0 : index
    %c0_199 = arith.constant 0 : index
    %187 = vector.load %arg6[%c25, %c0_198, %c0_199] : memref<54x8x32xf32, #tpu.memory_space<vmem>>, vector<1x8x32xf32>
    %188 = vector.shape_cast %187 : vector<1x8x32xf32> to vector<8x32xf32>
    %cst_200 = arith.constant dense<0.000000e+00> : vector<16x32xf32>
    %189 = tpu.matmul %186, %188, %cst_200 {dimension_numbers = #tpu.dot_dimension_numbers<[1], [0], [0], [1], [0, 0, 1, 1], [], []>} : vector<16x8xf32>, vector<8x32xf32>, vector<16x32xf32> -> vector<16x32xf32>
    %190 = arith.addf %185, %189 : vector<16x32xf32>
    %c8_201 = arith.constant 8 : index
    %c0_202 = arith.constant 0 : index
    %191 = vector.load %arg13[%c8_201, %c0_202] : memref<24x8xf32, #tpu.memory_space<vmem>>, vector<16x8xf32>
    %c26 = arith.constant 26 : index
    %c0_203 = arith.constant 0 : index
    %c0_204 = arith.constant 0 : index
    %192 = vector.load %arg6[%c26, %c0_203, %c0_204] : memref<54x8x32xf32, #tpu.memory_space<vmem>>, vector<1x8x32xf32>
    %193 = vector.shape_cast %192 : vector<1x8x32xf32> to vector<8x32xf32>
    %cst_205 = arith.constant dense<0.000000e+00> : vector<16x32xf32>
    %194 = tpu.matmul %191, %193, %cst_205 {dimension_numbers = #tpu.dot_dimension_numbers<[1], [0], [0], [1], [0, 0, 1, 1], [], []>} : vector<16x8xf32>, vector<8x32xf32>, vector<16x32xf32> -> vector<16x32xf32>
    %195 = arith.addf %190, %194 : vector<16x32xf32>
    %cst_206 = arith.constant 0.000000e+00 : f32
    %196 = vector.broadcast %cst_206 : f32 to vector<16x32xf32>
    %197 = arith.maximumf %195, %196 : vector<16x32xf32>
    %c0_207 = arith.constant 0 : index
    %c0_208 = arith.constant 0 : index
    %198 = vector.load %arg8[%c0_207, %c0_208] : memref<4x32xf32, #tpu.memory_space<vmem>>, vector<4x32xf32>
    %cst_209 = arith.constant dense<0.000000e+00> : vector<16x32xf32>
    %199 = tpu.matmul %9, %198, %cst_209 {dimension_numbers = #tpu.dot_dimension_numbers<[1], [0], [0], [1], [0, 0, 1, 1], [], []>} : vector<16x4xf32>, vector<4x32xf32>, vector<16x32xf32> -> vector<16x32xf32>
    %c0_210 = arith.constant 0 : index
    %c0_211 = arith.constant 0 : index
    %200 = vector.load %arg9[%c0_210, %c0_211] : memref<1x32xf32, #tpu.memory_space<vmem>>, vector<1x32xf32>
    %201 = vector.broadcast %200 : vector<1x32xf32> to vector<16x32xf32>
    %202 = arith.addf %199, %201 : vector<16x32xf32>
    %203 = arith.addf %197, %202 : vector<16x32xf32>
    %cst_212 = arith.constant 0.000000e+00 : f32
    %204 = vector.broadcast %cst_212 : f32 to vector<16x32xf32>
    %205 = arith.maximumf %203, %204 : vector<16x32xf32>
    %c1_213 = arith.constant 1 : index
    %c0_214 = arith.constant 0 : index
    %206 = vector.load %arg14[%c1_213, %c0_214] : memref<18x32xf32, #tpu.memory_space<vmem>>, vector<16x32xf32>
    tpu.vector_store %arg14[%c1_213, %c0_214], %205 {strides = array<i32>} : memref<18x32xf32, #tpu.memory_space<vmem>>, vector<16x32xf32>,
    %c0_215 = arith.constant 0 : index
    %c0_216 = arith.constant 0 : index
    %207 = vector.load %arg14[%c0_215, %c0_216] : memref<18x32xf32, #tpu.memory_space<vmem>>, vector<16x32xf32>
    %208 = arith.maximumf %205, %207 : vector<16x32xf32>
    %c2_217 = arith.constant 2 : index
    %c0_218 = arith.constant 0 : index
    %209 = vector.load %arg14[%c2_217, %c0_218] : memref<18x32xf32, #tpu.memory_space<vmem>>, vector<16x32xf32>
    %210 = arith.maximumf %208, %209 : vector<16x32xf32>
    %c2_219 = arith.constant 2 : index
    %c0_220 = arith.constant 0 : index
    %c0_221 = arith.constant 0 : index
    %211 = vector.load %arg4[%c2_219, %c0_220, %c0_221] : memref<5x32x8xf32, #tpu.memory_space<vmem>>, vector<1x32x8xf32>
    %212 = vector.shape_cast %211 : vector<1x32x8xf32> to vector<32x8xf32>
    %c2_222 = arith.constant 2 : index
    %c0_223 = arith.constant 0 : index
    %c0_224 = arith.constant 0 : index
    %213 = vector.load %arg5[%c2_222, %c0_223, %c0_224] : memref<5x32x32xf32, #tpu.memory_space<vmem>>, vector<1x32x32xf32>
    %214 = vector.shape_cast %213 : vector<1x32x32xf32> to vector<32x32xf32>
    %cst_225 = arith.constant dense<0.000000e+00> : vector<16x8xf32>
    %215 = tpu.matmul %205, %212, %cst_225 {dimension_numbers = #tpu.dot_dimension_numbers<[1], [0], [0], [1], [0, 0, 1, 1], [], []>} : vector<16x32xf32>, vector<32x8xf32>, vector<16x8xf32> -> vector<16x8xf32>
    %c4_226 = arith.constant 4 : index
    %c0_227 = arith.constant 0 : index
    %216 = vector.load %arg13[%c4_226, %c0_227] : memref<24x8xf32, #tpu.memory_space<vmem>>, vector<16x8xf32>
    tpu.vector_store %arg13[%c4_226, %c0_227], %215 {strides = array<i32>} : memref<24x8xf32, #tpu.memory_space<vmem>>, vector<16x8xf32>,
    %cst_228 = arith.constant dense<0.000000e+00> : vector<16x32xf32>
    %217 = tpu.matmul %210, %214, %cst_228 {dimension_numbers = #tpu.dot_dimension_numbers<[1], [0], [0], [1], [0, 0, 1, 1], [], []>} : vector<16x32xf32>, vector<32x32xf32>, vector<16x32xf32> -> vector<16x32xf32>
    %c3_229 = arith.constant 3 : index
    %c0_230 = arith.constant 0 : index
    %c0_231 = arith.constant 0 : index
    %218 = vector.load %arg7[%c3_229, %c0_230, %c0_231] : memref<6x1x32xf32, #tpu.memory_space<vmem>>, vector<1x1x32xf32>
    %219 = vector.shape_cast %218 : vector<1x1x32xf32> to vector<1x32xf32>
    %220 = vector.broadcast %219 : vector<1x32xf32> to vector<16x32xf32>
    %221 = arith.addf %217, %220 : vector<16x32xf32>
    %c0_232 = arith.constant 0 : index
    %c0_233 = arith.constant 0 : index
    %222 = vector.load %arg13[%c0_232, %c0_233] : memref<24x8xf32, #tpu.memory_space<vmem>>, vector<16x8xf32>
    %c27 = arith.constant 27 : index
    %c0_234 = arith.constant 0 : index
    %c0_235 = arith.constant 0 : index
    %223 = vector.load %arg6[%c27, %c0_234, %c0_235] : memref<54x8x32xf32, #tpu.memory_space<vmem>>, vector<1x8x32xf32>
    %224 = vector.shape_cast %223 : vector<1x8x32xf32> to vector<8x32xf32>
    %cst_236 = arith.constant dense<0.000000e+00> : vector<16x32xf32>
    %225 = tpu.matmul %222, %224, %cst_236 {dimension_numbers = #tpu.dot_dimension_numbers<[1], [0], [0], [1], [0, 0, 1, 1], [], []>} : vector<16x8xf32>, vector<8x32xf32>, vector<16x32xf32> -> vector<16x32xf32>
    %226 = arith.addf %221, %225 : vector<16x32xf32>
    %c1_237 = arith.constant 1 : index
    %c0_238 = arith.constant 0 : index
    %227 = vector.load %arg13[%c1_237, %c0_238] : memref<24x8xf32, #tpu.memory_space<vmem>>, vector<16x8xf32>
    %c28 = arith.constant 28 : index
    %c0_239 = arith.constant 0 : index
    %c0_240 = arith.constant 0 : index
    %228 = vector.load %arg6[%c28, %c0_239, %c0_240] : memref<54x8x32xf32, #tpu.memory_space<vmem>>, vector<1x8x32xf32>
    %229 = vector.shape_cast %228 : vector<1x8x32xf32> to vector<8x32xf32>
    %cst_241 = arith.constant dense<0.000000e+00> : vector<16x32xf32>
    %230 = tpu.matmul %227, %229, %cst_241 {dimension_numbers = #tpu.dot_dimension_numbers<[1], [0], [0], [1], [0, 0, 1, 1], [], []>} : vector<16x8xf32>, vector<8x32xf32>, vector<16x32xf32> -> vector<16x32xf32>
    %231 = arith.addf %226, %230 : vector<16x32xf32>
    %c2_242 = arith.constant 2 : index
    %c0_243 = arith.constant 0 : index
    %232 = vector.load %arg13[%c2_242, %c0_243] : memref<24x8xf32, #tpu.memory_space<vmem>>, vector<16x8xf32>
    %c29 = arith.constant 29 : index
    %c0_244 = arith.constant 0 : index
    %c0_245 = arith.constant 0 : index
    %233 = vector.load %arg6[%c29, %c0_244, %c0_245] : memref<54x8x32xf32, #tpu.memory_space<vmem>>, vector<1x8x32xf32>
    %234 = vector.shape_cast %233 : vector<1x8x32xf32> to vector<8x32xf32>
    %cst_246 = arith.constant dense<0.000000e+00> : vector<16x32xf32>
    %235 = tpu.matmul %232, %234, %cst_246 {dimension_numbers = #tpu.dot_dimension_numbers<[1], [0], [0], [1], [0, 0, 1, 1], [], []>} : vector<16x8xf32>, vector<8x32xf32>, vector<16x32xf32> -> vector<16x32xf32>
    %236 = arith.addf %231, %235 : vector<16x32xf32>
    %c3_247 = arith.constant 3 : index
    %c0_248 = arith.constant 0 : index
    %237 = vector.load %arg13[%c3_247, %c0_248] : memref<24x8xf32, #tpu.memory_space<vmem>>, vector<16x8xf32>
    %c30 = arith.constant 30 : index
    %c0_249 = arith.constant 0 : index
    %c0_250 = arith.constant 0 : index
    %238 = vector.load %arg6[%c30, %c0_249, %c0_250] : memref<54x8x32xf32, #tpu.memory_space<vmem>>, vector<1x8x32xf32>
    %239 = vector.shape_cast %238 : vector<1x8x32xf32> to vector<8x32xf32>
    %cst_251 = arith.constant dense<0.000000e+00> : vector<16x32xf32>
    %240 = tpu.matmul %237, %239, %cst_251 {dimension_numbers = #tpu.dot_dimension_numbers<[1], [0], [0], [1], [0, 0, 1, 1], [], []>} : vector<16x8xf32>, vector<8x32xf32>, vector<16x32xf32> -> vector<16x32xf32>
    %241 = arith.addf %236, %240 : vector<16x32xf32>
    %c4_252 = arith.constant 4 : index
    %c0_253 = arith.constant 0 : index
    %242 = vector.load %arg13[%c4_252, %c0_253] : memref<24x8xf32, #tpu.memory_space<vmem>>, vector<16x8xf32>
    %c31 = arith.constant 31 : index
    %c0_254 = arith.constant 0 : index
    %c0_255 = arith.constant 0 : index
    %243 = vector.load %arg6[%c31, %c0_254, %c0_255] : memref<54x8x32xf32, #tpu.memory_space<vmem>>, vector<1x8x32xf32>
    %244 = vector.shape_cast %243 : vector<1x8x32xf32> to vector<8x32xf32>
    %cst_256 = arith.constant dense<0.000000e+00> : vector<16x32xf32>
    %245 = tpu.matmul %242, %244, %cst_256 {dimension_numbers = #tpu.dot_dimension_numbers<[1], [0], [0], [1], [0, 0, 1, 1], [], []>} : vector<16x8xf32>, vector<8x32xf32>, vector<16x32xf32> -> vector<16x32xf32>
    %246 = arith.addf %241, %245 : vector<16x32xf32>
    %c5_257 = arith.constant 5 : index
    %c0_258 = arith.constant 0 : index
    %247 = vector.load %arg13[%c5_257, %c0_258] : memref<24x8xf32, #tpu.memory_space<vmem>>, vector<16x8xf32>
    %c32 = arith.constant 32 : index
    %c0_259 = arith.constant 0 : index
    %c0_260 = arith.constant 0 : index
    %248 = vector.load %arg6[%c32, %c0_259, %c0_260] : memref<54x8x32xf32, #tpu.memory_space<vmem>>, vector<1x8x32xf32>
    %249 = vector.shape_cast %248 : vector<1x8x32xf32> to vector<8x32xf32>
    %cst_261 = arith.constant dense<0.000000e+00> : vector<16x32xf32>
    %250 = tpu.matmul %247, %249, %cst_261 {dimension_numbers = #tpu.dot_dimension_numbers<[1], [0], [0], [1], [0, 0, 1, 1], [], []>} : vector<16x8xf32>, vector<8x32xf32>, vector<16x32xf32> -> vector<16x32xf32>
    %251 = arith.addf %246, %250 : vector<16x32xf32>
    %c6_262 = arith.constant 6 : index
    %c0_263 = arith.constant 0 : index
    %252 = vector.load %arg13[%c6_262, %c0_263] : memref<24x8xf32, #tpu.memory_space<vmem>>, vector<16x8xf32>
    %c33 = arith.constant 33 : index
    %c0_264 = arith.constant 0 : index
    %c0_265 = arith.constant 0 : index
    %253 = vector.load %arg6[%c33, %c0_264, %c0_265] : memref<54x8x32xf32, #tpu.memory_space<vmem>>, vector<1x8x32xf32>
    %254 = vector.shape_cast %253 : vector<1x8x32xf32> to vector<8x32xf32>
    %cst_266 = arith.constant dense<0.000000e+00> : vector<16x32xf32>
    %255 = tpu.matmul %252, %254, %cst_266 {dimension_numbers = #tpu.dot_dimension_numbers<[1], [0], [0], [1], [0, 0, 1, 1], [], []>} : vector<16x8xf32>, vector<8x32xf32>, vector<16x32xf32> -> vector<16x32xf32>
    %256 = arith.addf %251, %255 : vector<16x32xf32>
    %c7_267 = arith.constant 7 : index
    %c0_268 = arith.constant 0 : index
    %257 = vector.load %arg13[%c7_267, %c0_268] : memref<24x8xf32, #tpu.memory_space<vmem>>, vector<16x8xf32>
    %c34 = arith.constant 34 : index
    %c0_269 = arith.constant 0 : index
    %c0_270 = arith.constant 0 : index
    %258 = vector.load %arg6[%c34, %c0_269, %c0_270] : memref<54x8x32xf32, #tpu.memory_space<vmem>>, vector<1x8x32xf32>
    %259 = vector.shape_cast %258 : vector<1x8x32xf32> to vector<8x32xf32>
    %cst_271 = arith.constant dense<0.000000e+00> : vector<16x32xf32>
    %260 = tpu.matmul %257, %259, %cst_271 {dimension_numbers = #tpu.dot_dimension_numbers<[1], [0], [0], [1], [0, 0, 1, 1], [], []>} : vector<16x8xf32>, vector<8x32xf32>, vector<16x32xf32> -> vector<16x32xf32>
    %261 = arith.addf %256, %260 : vector<16x32xf32>
    %c8_272 = arith.constant 8 : index
    %c0_273 = arith.constant 0 : index
    %262 = vector.load %arg13[%c8_272, %c0_273] : memref<24x8xf32, #tpu.memory_space<vmem>>, vector<16x8xf32>
    %c35 = arith.constant 35 : index
    %c0_274 = arith.constant 0 : index
    %c0_275 = arith.constant 0 : index
    %263 = vector.load %arg6[%c35, %c0_274, %c0_275] : memref<54x8x32xf32, #tpu.memory_space<vmem>>, vector<1x8x32xf32>
    %264 = vector.shape_cast %263 : vector<1x8x32xf32> to vector<8x32xf32>
    %cst_276 = arith.constant dense<0.000000e+00> : vector<16x32xf32>
    %265 = tpu.matmul %262, %264, %cst_276 {dimension_numbers = #tpu.dot_dimension_numbers<[1], [0], [0], [1], [0, 0, 1, 1], [], []>} : vector<16x8xf32>, vector<8x32xf32>, vector<16x32xf32> -> vector<16x32xf32>
    %266 = arith.addf %261, %265 : vector<16x32xf32>
    %cst_277 = arith.constant 0.000000e+00 : f32
    %267 = vector.broadcast %cst_277 : f32 to vector<16x32xf32>
    %268 = arith.maximumf %266, %267 : vector<16x32xf32>
    %c1_278 = arith.constant 1 : index
    %c0_279 = arith.constant 0 : index
    %269 = vector.load %arg14[%c1_278, %c0_279] : memref<18x32xf32, #tpu.memory_space<vmem>>, vector<16x32xf32>
    tpu.vector_store %arg14[%c1_278, %c0_279], %268 {strides = array<i32>} : memref<18x32xf32, #tpu.memory_space<vmem>>, vector<16x32xf32>,
    %c0_280 = arith.constant 0 : index
    %c0_281 = arith.constant 0 : index
    %270 = vector.load %arg14[%c0_280, %c0_281] : memref<18x32xf32, #tpu.memory_space<vmem>>, vector<16x32xf32>
    %271 = arith.maximumf %268, %270 : vector<16x32xf32>
    %c2_282 = arith.constant 2 : index
    %c0_283 = arith.constant 0 : index
    %272 = vector.load %arg14[%c2_282, %c0_283] : memref<18x32xf32, #tpu.memory_space<vmem>>, vector<16x32xf32>
    %273 = arith.maximumf %271, %272 : vector<16x32xf32>
    %c3_284 = arith.constant 3 : index
    %c0_285 = arith.constant 0 : index
    %c0_286 = arith.constant 0 : index
    %274 = vector.load %arg4[%c3_284, %c0_285, %c0_286] : memref<5x32x8xf32, #tpu.memory_space<vmem>>, vector<1x32x8xf32>
    %275 = vector.shape_cast %274 : vector<1x32x8xf32> to vector<32x8xf32>
    %c3_287 = arith.constant 3 : index
    %c0_288 = arith.constant 0 : index
    %c0_289 = arith.constant 0 : index
    %276 = vector.load %arg5[%c3_287, %c0_288, %c0_289] : memref<5x32x32xf32, #tpu.memory_space<vmem>>, vector<1x32x32xf32>
    %277 = vector.shape_cast %276 : vector<1x32x32xf32> to vector<32x32xf32>
    %cst_290 = arith.constant dense<0.000000e+00> : vector<16x8xf32>
    %278 = tpu.matmul %268, %275, %cst_290 {dimension_numbers = #tpu.dot_dimension_numbers<[1], [0], [0], [1], [0, 0, 1, 1], [], []>} : vector<16x32xf32>, vector<32x8xf32>, vector<16x8xf32> -> vector<16x8xf32>
    %c4_291 = arith.constant 4 : index
    %c0_292 = arith.constant 0 : index
    %279 = vector.load %arg13[%c4_291, %c0_292] : memref<24x8xf32, #tpu.memory_space<vmem>>, vector<16x8xf32>
    tpu.vector_store %arg13[%c4_291, %c0_292], %278 {strides = array<i32>} : memref<24x8xf32, #tpu.memory_space<vmem>>, vector<16x8xf32>,
    %cst_293 = arith.constant dense<0.000000e+00> : vector<16x32xf32>
    %280 = tpu.matmul %273, %277, %cst_293 {dimension_numbers = #tpu.dot_dimension_numbers<[1], [0], [0], [1], [0, 0, 1, 1], [], []>} : vector<16x32xf32>, vector<32x32xf32>, vector<16x32xf32> -> vector<16x32xf32>
    %c4_294 = arith.constant 4 : index
    %c0_295 = arith.constant 0 : index
    %c0_296 = arith.constant 0 : index
    %281 = vector.load %arg7[%c4_294, %c0_295, %c0_296] : memref<6x1x32xf32, #tpu.memory_space<vmem>>, vector<1x1x32xf32>
    %282 = vector.shape_cast %281 : vector<1x1x32xf32> to vector<1x32xf32>
    %283 = vector.broadcast %282 : vector<1x32xf32> to vector<16x32xf32>
    %284 = arith.addf %280, %283 : vector<16x32xf32>
    %c0_297 = arith.constant 0 : index
    %c0_298 = arith.constant 0 : index
    %285 = vector.load %arg13[%c0_297, %c0_298] : memref<24x8xf32, #tpu.memory_space<vmem>>, vector<16x8xf32>
    %c36 = arith.constant 36 : index
    %c0_299 = arith.constant 0 : index
    %c0_300 = arith.constant 0 : index
    %286 = vector.load %arg6[%c36, %c0_299, %c0_300] : memref<54x8x32xf32, #tpu.memory_space<vmem>>, vector<1x8x32xf32>
    %287 = vector.shape_cast %286 : vector<1x8x32xf32> to vector<8x32xf32>
    %cst_301 = arith.constant dense<0.000000e+00> : vector<16x32xf32>
    %288 = tpu.matmul %285, %287, %cst_301 {dimension_numbers = #tpu.dot_dimension_numbers<[1], [0], [0], [1], [0, 0, 1, 1], [], []>} : vector<16x8xf32>, vector<8x32xf32>, vector<16x32xf32> -> vector<16x32xf32>
    %289 = arith.addf %284, %288 : vector<16x32xf32>
    %c1_302 = arith.constant 1 : index
    %c0_303 = arith.constant 0 : index
    %290 = vector.load %arg13[%c1_302, %c0_303] : memref<24x8xf32, #tpu.memory_space<vmem>>, vector<16x8xf32>
    %c37 = arith.constant 37 : index
    %c0_304 = arith.constant 0 : index
    %c0_305 = arith.constant 0 : index
    %291 = vector.load %arg6[%c37, %c0_304, %c0_305] : memref<54x8x32xf32, #tpu.memory_space<vmem>>, vector<1x8x32xf32>
    %292 = vector.shape_cast %291 : vector<1x8x32xf32> to vector<8x32xf32>
    %cst_306 = arith.constant dense<0.000000e+00> : vector<16x32xf32>
    %293 = tpu.matmul %290, %292, %cst_306 {dimension_numbers = #tpu.dot_dimension_numbers<[1], [0], [0], [1], [0, 0, 1, 1], [], []>} : vector<16x8xf32>, vector<8x32xf32>, vector<16x32xf32> -> vector<16x32xf32>
    %294 = arith.addf %289, %293 : vector<16x32xf32>
    %c2_307 = arith.constant 2 : index
    %c0_308 = arith.constant 0 : index
    %295 = vector.load %arg13[%c2_307, %c0_308] : memref<24x8xf32, #tpu.memory_space<vmem>>, vector<16x8xf32>
    %c38 = arith.constant 38 : index
    %c0_309 = arith.constant 0 : index
    %c0_310 = arith.constant 0 : index
    %296 = vector.load %arg6[%c38, %c0_309, %c0_310] : memref<54x8x32xf32, #tpu.memory_space<vmem>>, vector<1x8x32xf32>
    %297 = vector.shape_cast %296 : vector<1x8x32xf32> to vector<8x32xf32>
    %cst_311 = arith.constant dense<0.000000e+00> : vector<16x32xf32>
    %298 = tpu.matmul %295, %297, %cst_311 {dimension_numbers = #tpu.dot_dimension_numbers<[1], [0], [0], [1], [0, 0, 1, 1], [], []>} : vector<16x8xf32>, vector<8x32xf32>, vector<16x32xf32> -> vector<16x32xf32>
    %299 = arith.addf %294, %298 : vector<16x32xf32>
    %c3_312 = arith.constant 3 : index
    %c0_313 = arith.constant 0 : index
    %300 = vector.load %arg13[%c3_312, %c0_313] : memref<24x8xf32, #tpu.memory_space<vmem>>, vector<16x8xf32>
    %c39 = arith.constant 39 : index
    %c0_314 = arith.constant 0 : index
    %c0_315 = arith.constant 0 : index
    %301 = vector.load %arg6[%c39, %c0_314, %c0_315] : memref<54x8x32xf32, #tpu.memory_space<vmem>>, vector<1x8x32xf32>
    %302 = vector.shape_cast %301 : vector<1x8x32xf32> to vector<8x32xf32>
    %cst_316 = arith.constant dense<0.000000e+00> : vector<16x32xf32>
    %303 = tpu.matmul %300, %302, %cst_316 {dimension_numbers = #tpu.dot_dimension_numbers<[1], [0], [0], [1], [0, 0, 1, 1], [], []>} : vector<16x8xf32>, vector<8x32xf32>, vector<16x32xf32> -> vector<16x32xf32>
    %304 = arith.addf %299, %303 : vector<16x32xf32>
    %c4_317 = arith.constant 4 : index
    %c0_318 = arith.constant 0 : index
    %305 = vector.load %arg13[%c4_317, %c0_318] : memref<24x8xf32, #tpu.memory_space<vmem>>, vector<16x8xf32>
    %c40 = arith.constant 40 : index
    %c0_319 = arith.constant 0 : index
    %c0_320 = arith.constant 0 : index
    %306 = vector.load %arg6[%c40, %c0_319, %c0_320] : memref<54x8x32xf32, #tpu.memory_space<vmem>>, vector<1x8x32xf32>
    %307 = vector.shape_cast %306 : vector<1x8x32xf32> to vector<8x32xf32>
    %cst_321 = arith.constant dense<0.000000e+00> : vector<16x32xf32>
    %308 = tpu.matmul %305, %307, %cst_321 {dimension_numbers = #tpu.dot_dimension_numbers<[1], [0], [0], [1], [0, 0, 1, 1], [], []>} : vector<16x8xf32>, vector<8x32xf32>, vector<16x32xf32> -> vector<16x32xf32>
    %309 = arith.addf %304, %308 : vector<16x32xf32>
    %c5_322 = arith.constant 5 : index
    %c0_323 = arith.constant 0 : index
    %310 = vector.load %arg13[%c5_322, %c0_323] : memref<24x8xf32, #tpu.memory_space<vmem>>, vector<16x8xf32>
    %c41 = arith.constant 41 : index
    %c0_324 = arith.constant 0 : index
    %c0_325 = arith.constant 0 : index
    %311 = vector.load %arg6[%c41, %c0_324, %c0_325] : memref<54x8x32xf32, #tpu.memory_space<vmem>>, vector<1x8x32xf32>
    %312 = vector.shape_cast %311 : vector<1x8x32xf32> to vector<8x32xf32>
    %cst_326 = arith.constant dense<0.000000e+00> : vector<16x32xf32>
    %313 = tpu.matmul %310, %312, %cst_326 {dimension_numbers = #tpu.dot_dimension_numbers<[1], [0], [0], [1], [0, 0, 1, 1], [], []>} : vector<16x8xf32>, vector<8x32xf32>, vector<16x32xf32> -> vector<16x32xf32>
    %314 = arith.addf %309, %313 : vector<16x32xf32>
    %c6_327 = arith.constant 6 : index
    %c0_328 = arith.constant 0 : index
    %315 = vector.load %arg13[%c6_327, %c0_328] : memref<24x8xf32, #tpu.memory_space<vmem>>, vector<16x8xf32>
    %c42 = arith.constant 42 : index
    %c0_329 = arith.constant 0 : index
    %c0_330 = arith.constant 0 : index
    %316 = vector.load %arg6[%c42, %c0_329, %c0_330] : memref<54x8x32xf32, #tpu.memory_space<vmem>>, vector<1x8x32xf32>
    %317 = vector.shape_cast %316 : vector<1x8x32xf32> to vector<8x32xf32>
    %cst_331 = arith.constant dense<0.000000e+00> : vector<16x32xf32>
    %318 = tpu.matmul %315, %317, %cst_331 {dimension_numbers = #tpu.dot_dimension_numbers<[1], [0], [0], [1], [0, 0, 1, 1], [], []>} : vector<16x8xf32>, vector<8x32xf32>, vector<16x32xf32> -> vector<16x32xf32>
    %319 = arith.addf %314, %318 : vector<16x32xf32>
    %c7_332 = arith.constant 7 : index
    %c0_333 = arith.constant 0 : index
    %320 = vector.load %arg13[%c7_332, %c0_333] : memref<24x8xf32, #tpu.memory_space<vmem>>, vector<16x8xf32>
    %c43 = arith.constant 43 : index
    %c0_334 = arith.constant 0 : index
    %c0_335 = arith.constant 0 : index
    %321 = vector.load %arg6[%c43, %c0_334, %c0_335] : memref<54x8x32xf32, #tpu.memory_space<vmem>>, vector<1x8x32xf32>
    %322 = vector.shape_cast %321 : vector<1x8x32xf32> to vector<8x32xf32>
    %cst_336 = arith.constant dense<0.000000e+00> : vector<16x32xf32>
    %323 = tpu.matmul %320, %322, %cst_336 {dimension_numbers = #tpu.dot_dimension_numbers<[1], [0], [0], [1], [0, 0, 1, 1], [], []>} : vector<16x8xf32>, vector<8x32xf32>, vector<16x32xf32> -> vector<16x32xf32>
    %324 = arith.addf %319, %323 : vector<16x32xf32>
    %c8_337 = arith.constant 8 : index
    %c0_338 = arith.constant 0 : index
    %325 = vector.load %arg13[%c8_337, %c0_338] : memref<24x8xf32, #tpu.memory_space<vmem>>, vector<16x8xf32>
    %c44 = arith.constant 44 : index
    %c0_339 = arith.constant 0 : index
    %c0_340 = arith.constant 0 : index
    %326 = vector.load %arg6[%c44, %c0_339, %c0_340] : memref<54x8x32xf32, #tpu.memory_space<vmem>>, vector<1x8x32xf32>
    %327 = vector.shape_cast %326 : vector<1x8x32xf32> to vector<8x32xf32>
    %cst_341 = arith.constant dense<0.000000e+00> : vector<16x32xf32>
    %328 = tpu.matmul %325, %327, %cst_341 {dimension_numbers = #tpu.dot_dimension_numbers<[1], [0], [0], [1], [0, 0, 1, 1], [], []>} : vector<16x8xf32>, vector<8x32xf32>, vector<16x32xf32> -> vector<16x32xf32>
    %329 = arith.addf %324, %328 : vector<16x32xf32>
    %cst_342 = arith.constant 0.000000e+00 : f32
    %330 = vector.broadcast %cst_342 : f32 to vector<16x32xf32>
    %331 = arith.maximumf %329, %330 : vector<16x32xf32>
    %c1_343 = arith.constant 1 : index
    %c0_344 = arith.constant 0 : index
    %332 = vector.load %arg14[%c1_343, %c0_344] : memref<18x32xf32, #tpu.memory_space<vmem>>, vector<16x32xf32>
    tpu.vector_store %arg14[%c1_343, %c0_344], %331 {strides = array<i32>} : memref<18x32xf32, #tpu.memory_space<vmem>>, vector<16x32xf32>,
    %c0_345 = arith.constant 0 : index
    %c0_346 = arith.constant 0 : index
    %333 = vector.load %arg14[%c0_345, %c0_346] : memref<18x32xf32, #tpu.memory_space<vmem>>, vector<16x32xf32>
    %334 = arith.maximumf %331, %333 : vector<16x32xf32>
    %c2_347 = arith.constant 2 : index
    %c0_348 = arith.constant 0 : index
    %335 = vector.load %arg14[%c2_347, %c0_348] : memref<18x32xf32, #tpu.memory_space<vmem>>, vector<16x32xf32>
    %336 = arith.maximumf %334, %335 : vector<16x32xf32>
    %c4_349 = arith.constant 4 : index
    %c0_350 = arith.constant 0 : index
    %c0_351 = arith.constant 0 : index
    %337 = vector.load %arg4[%c4_349, %c0_350, %c0_351] : memref<5x32x8xf32, #tpu.memory_space<vmem>>, vector<1x32x8xf32>
    %338 = vector.shape_cast %337 : vector<1x32x8xf32> to vector<32x8xf32>
    %c4_352 = arith.constant 4 : index
    %c0_353 = arith.constant 0 : index
    %c0_354 = arith.constant 0 : index
    %339 = vector.load %arg5[%c4_352, %c0_353, %c0_354] : memref<5x32x32xf32, #tpu.memory_space<vmem>>, vector<1x32x32xf32>
    %340 = vector.shape_cast %339 : vector<1x32x32xf32> to vector<32x32xf32>
    %cst_355 = arith.constant dense<0.000000e+00> : vector<16x8xf32>
    %341 = tpu.matmul %331, %338, %cst_355 {dimension_numbers = #tpu.dot_dimension_numbers<[1], [0], [0], [1], [0, 0, 1, 1], [], []>} : vector<16x32xf32>, vector<32x8xf32>, vector<16x8xf32> -> vector<16x8xf32>
    %c4_356 = arith.constant 4 : index
    %c0_357 = arith.constant 0 : index
    %342 = vector.load %arg13[%c4_356, %c0_357] : memref<24x8xf32, #tpu.memory_space<vmem>>, vector<16x8xf32>
    tpu.vector_store %arg13[%c4_356, %c0_357], %341 {strides = array<i32>} : memref<24x8xf32, #tpu.memory_space<vmem>>, vector<16x8xf32>,
    %cst_358 = arith.constant dense<0.000000e+00> : vector<16x32xf32>
    %343 = tpu.matmul %336, %340, %cst_358 {dimension_numbers = #tpu.dot_dimension_numbers<[1], [0], [0], [1], [0, 0, 1, 1], [], []>} : vector<16x32xf32>, vector<32x32xf32>, vector<16x32xf32> -> vector<16x32xf32>
    %c5_359 = arith.constant 5 : index
    %c0_360 = arith.constant 0 : index
    %c0_361 = arith.constant 0 : index
    %344 = vector.load %arg7[%c5_359, %c0_360, %c0_361] : memref<6x1x32xf32, #tpu.memory_space<vmem>>, vector<1x1x32xf32>
    %345 = vector.shape_cast %344 : vector<1x1x32xf32> to vector<1x32xf32>
    %346 = vector.broadcast %345 : vector<1x32xf32> to vector<16x32xf32>
    %347 = arith.addf %343, %346 : vector<16x32xf32>
    %c0_362 = arith.constant 0 : index
    %c0_363 = arith.constant 0 : index
    %348 = vector.load %arg13[%c0_362, %c0_363] : memref<24x8xf32, #tpu.memory_space<vmem>>, vector<16x8xf32>
    %c45 = arith.constant 45 : index
    %c0_364 = arith.constant 0 : index
    %c0_365 = arith.constant 0 : index
    %349 = vector.load %arg6[%c45, %c0_364, %c0_365] : memref<54x8x32xf32, #tpu.memory_space<vmem>>, vector<1x8x32xf32>
    %350 = vector.shape_cast %349 : vector<1x8x32xf32> to vector<8x32xf32>
    %cst_366 = arith.constant dense<0.000000e+00> : vector<16x32xf32>
    %351 = tpu.matmul %348, %350, %cst_366 {dimension_numbers = #tpu.dot_dimension_numbers<[1], [0], [0], [1], [0, 0, 1, 1], [], []>} : vector<16x8xf32>, vector<8x32xf32>, vector<16x32xf32> -> vector<16x32xf32>
    %352 = arith.addf %347, %351 : vector<16x32xf32>
    %c1_367 = arith.constant 1 : index
    %c0_368 = arith.constant 0 : index
    %353 = vector.load %arg13[%c1_367, %c0_368] : memref<24x8xf32, #tpu.memory_space<vmem>>, vector<16x8xf32>
    %c46 = arith.constant 46 : index
    %c0_369 = arith.constant 0 : index
    %c0_370 = arith.constant 0 : index
    %354 = vector.load %arg6[%c46, %c0_369, %c0_370] : memref<54x8x32xf32, #tpu.memory_space<vmem>>, vector<1x8x32xf32>
    %355 = vector.shape_cast %354 : vector<1x8x32xf32> to vector<8x32xf32>
    %cst_371 = arith.constant dense<0.000000e+00> : vector<16x32xf32>
    %356 = tpu.matmul %353, %355, %cst_371 {dimension_numbers = #tpu.dot_dimension_numbers<[1], [0], [0], [1], [0, 0, 1, 1], [], []>} : vector<16x8xf32>, vector<8x32xf32>, vector<16x32xf32> -> vector<16x32xf32>
    %357 = arith.addf %352, %356 : vector<16x32xf32>
    %c2_372 = arith.constant 2 : index
    %c0_373 = arith.constant 0 : index
    %358 = vector.load %arg13[%c2_372, %c0_373] : memref<24x8xf32, #tpu.memory_space<vmem>>, vector<16x8xf32>
    %c47 = arith.constant 47 : index
    %c0_374 = arith.constant 0 : index
    %c0_375 = arith.constant 0 : index
    %359 = vector.load %arg6[%c47, %c0_374, %c0_375] : memref<54x8x32xf32, #tpu.memory_space<vmem>>, vector<1x8x32xf32>
    %360 = vector.shape_cast %359 : vector<1x8x32xf32> to vector<8x32xf32>
    %cst_376 = arith.constant dense<0.000000e+00> : vector<16x32xf32>
    %361 = tpu.matmul %358, %360, %cst_376 {dimension_numbers = #tpu.dot_dimension_numbers<[1], [0], [0], [1], [0, 0, 1, 1], [], []>} : vector<16x8xf32>, vector<8x32xf32>, vector<16x32xf32> -> vector<16x32xf32>
    %362 = arith.addf %357, %361 : vector<16x32xf32>
    %c3_377 = arith.constant 3 : index
    %c0_378 = arith.constant 0 : index
    %363 = vector.load %arg13[%c3_377, %c0_378] : memref<24x8xf32, #tpu.memory_space<vmem>>, vector<16x8xf32>
    %c48 = arith.constant 48 : index
    %c0_379 = arith.constant 0 : index
    %c0_380 = arith.constant 0 : index
    %364 = vector.load %arg6[%c48, %c0_379, %c0_380] : memref<54x8x32xf32, #tpu.memory_space<vmem>>, vector<1x8x32xf32>
    %365 = vector.shape_cast %364 : vector<1x8x32xf32> to vector<8x32xf32>
    %cst_381 = arith.constant dense<0.000000e+00> : vector<16x32xf32>
    %366 = tpu.matmul %363, %365, %cst_381 {dimension_numbers = #tpu.dot_dimension_numbers<[1], [0], [0], [1], [0, 0, 1, 1], [], []>} : vector<16x8xf32>, vector<8x32xf32>, vector<16x32xf32> -> vector<16x32xf32>
    %367 = arith.addf %362, %366 : vector<16x32xf32>
    %c4_382 = arith.constant 4 : index
    %c0_383 = arith.constant 0 : index
    %368 = vector.load %arg13[%c4_382, %c0_383] : memref<24x8xf32, #tpu.memory_space<vmem>>, vector<16x8xf32>
    %c49 = arith.constant 49 : index
    %c0_384 = arith.constant 0 : index
    %c0_385 = arith.constant 0 : index
    %369 = vector.load %arg6[%c49, %c0_384, %c0_385] : memref<54x8x32xf32, #tpu.memory_space<vmem>>, vector<1x8x32xf32>
    %370 = vector.shape_cast %369 : vector<1x8x32xf32> to vector<8x32xf32>
    %cst_386 = arith.constant dense<0.000000e+00> : vector<16x32xf32>
    %371 = tpu.matmul %368, %370, %cst_386 {dimension_numbers = #tpu.dot_dimension_numbers<[1], [0], [0], [1], [0, 0, 1, 1], [], []>} : vector<16x8xf32>, vector<8x32xf32>, vector<16x32xf32> -> vector<16x32xf32>
    %372 = arith.addf %367, %371 : vector<16x32xf32>
    %c5_387 = arith.constant 5 : index
    %c0_388 = arith.constant 0 : index
    %373 = vector.load %arg13[%c5_387, %c0_388] : memref<24x8xf32, #tpu.memory_space<vmem>>, vector<16x8xf32>
    %c50 = arith.constant 50 : index
    %c0_389 = arith.constant 0 : index
    %c0_390 = arith.constant 0 : index
    %374 = vector.load %arg6[%c50, %c0_389, %c0_390] : memref<54x8x32xf32, #tpu.memory_space<vmem>>, vector<1x8x32xf32>
    %375 = vector.shape_cast %374 : vector<1x8x32xf32> to vector<8x32xf32>
    %cst_391 = arith.constant dense<0.000000e+00> : vector<16x32xf32>
    %376 = tpu.matmul %373, %375, %cst_391 {dimension_numbers = #tpu.dot_dimension_numbers<[1], [0], [0], [1], [0, 0, 1, 1], [], []>} : vector<16x8xf32>, vector<8x32xf32>, vector<16x32xf32> -> vector<16x32xf32>
    %377 = arith.addf %372, %376 : vector<16x32xf32>
    %c6_392 = arith.constant 6 : index
    %c0_393 = arith.constant 0 : index
    %378 = vector.load %arg13[%c6_392, %c0_393] : memref<24x8xf32, #tpu.memory_space<vmem>>, vector<16x8xf32>
    %c51 = arith.constant 51 : index
    %c0_394 = arith.constant 0 : index
    %c0_395 = arith.constant 0 : index
    %379 = vector.load %arg6[%c51, %c0_394, %c0_395] : memref<54x8x32xf32, #tpu.memory_space<vmem>>, vector<1x8x32xf32>
    %380 = vector.shape_cast %379 : vector<1x8x32xf32> to vector<8x32xf32>
    %cst_396 = arith.constant dense<0.000000e+00> : vector<16x32xf32>
    %381 = tpu.matmul %378, %380, %cst_396 {dimension_numbers = #tpu.dot_dimension_numbers<[1], [0], [0], [1], [0, 0, 1, 1], [], []>} : vector<16x8xf32>, vector<8x32xf32>, vector<16x32xf32> -> vector<16x32xf32>
    %382 = arith.addf %377, %381 : vector<16x32xf32>
    %c7_397 = arith.constant 7 : index
    %c0_398 = arith.constant 0 : index
    %383 = vector.load %arg13[%c7_397, %c0_398] : memref<24x8xf32, #tpu.memory_space<vmem>>, vector<16x8xf32>
    %c52 = arith.constant 52 : index
    %c0_399 = arith.constant 0 : index
    %c0_400 = arith.constant 0 : index
    %384 = vector.load %arg6[%c52, %c0_399, %c0_400] : memref<54x8x32xf32, #tpu.memory_space<vmem>>, vector<1x8x32xf32>
    %385 = vector.shape_cast %384 : vector<1x8x32xf32> to vector<8x32xf32>
    %cst_401 = arith.constant dense<0.000000e+00> : vector<16x32xf32>
    %386 = tpu.matmul %383, %385, %cst_401 {dimension_numbers = #tpu.dot_dimension_numbers<[1], [0], [0], [1], [0, 0, 1, 1], [], []>} : vector<16x8xf32>, vector<8x32xf32>, vector<16x32xf32> -> vector<16x32xf32>
    %387 = arith.addf %382, %386 : vector<16x32xf32>
    %c8_402 = arith.constant 8 : index
    %c0_403 = arith.constant 0 : index
    %388 = vector.load %arg13[%c8_402, %c0_403] : memref<24x8xf32, #tpu.memory_space<vmem>>, vector<16x8xf32>
    %c53 = arith.constant 53 : index
    %c0_404 = arith.constant 0 : index
    %c0_405 = arith.constant 0 : index
    %389 = vector.load %arg6[%c53, %c0_404, %c0_405] : memref<54x8x32xf32, #tpu.memory_space<vmem>>, vector<1x8x32xf32>
    %390 = vector.shape_cast %389 : vector<1x8x32xf32> to vector<8x32xf32>
    %cst_406 = arith.constant dense<0.000000e+00> : vector<16x32xf32>
    %391 = tpu.matmul %388, %390, %cst_406 {dimension_numbers = #tpu.dot_dimension_numbers<[1], [0], [0], [1], [0, 0, 1, 1], [], []>} : vector<16x8xf32>, vector<8x32xf32>, vector<16x32xf32> -> vector<16x32xf32>
    %392 = arith.addf %387, %391 : vector<16x32xf32>
    %cst_407 = arith.constant 0.000000e+00 : f32
    %393 = vector.broadcast %cst_407 : f32 to vector<16x32xf32>
    %394 = arith.maximumf %392, %393 : vector<16x32xf32>
    %c0_408 = arith.constant 0 : index
    %c0_409 = arith.constant 0 : index
    %395 = vector.load %arg10[%c0_408, %c0_409] : memref<1x32xf32, #tpu.memory_space<vmem>>, vector<1x32xf32>
    %396 = vector.broadcast %395 : vector<1x32xf32> to vector<16x32xf32>
    %397 = arith.mulf %205, %396 : vector<16x32xf32>
    %c0_410 = arith.constant 0 : index
    %c0_411 = arith.constant 0 : index
    %398 = vector.load %arg11[%c0_410, %c0_411] : memref<1x32xf32, #tpu.memory_space<vmem>>, vector<1x32xf32>
    %399 = vector.broadcast %398 : vector<1x32xf32> to vector<16x32xf32>
    %400 = arith.addf %397, %399 : vector<16x32xf32>
    %401 = arith.addf %394, %400 : vector<16x32xf32>
    %cst_412 = arith.constant 0.000000e+00 : f32
    %402 = vector.broadcast %cst_412 : f32 to vector<16x32xf32>
    %403 = arith.maximumf %401, %402 : vector<16x32xf32>
    %c0_413 = arith.constant 0 : index
    %c0_414 = arith.constant 0 : index
    %c0_415 = arith.constant 0 : index
    %404 = vector.load %arg12[%c0_413, %c0_414, %c0_415] : memref<1x16x32xf32, #tpu.memory_space<vmem>>, vector<1x16x32xf32>
    %405 = vector.shape_cast %404 : vector<1x16x32xf32> to vector<16x32xf32>
    %406 = vector.shape_cast %403 : vector<16x32xf32> to vector<1x16x32xf32>
    tpu.vector_store %arg12[%c0_413, %c0_414, %c0_415], %406 {strides = array<i32>} : memref<1x16x32xf32, #tpu.memory_space<vmem>>, vector<1x16x32xf32>,
    return
  }
  func.func @transform_0(%arg0: i32) -> (i32, i32, i32) {
    %c0_i32 = arith.constant 0 : i32
    %c0_i32_0 = arith.constant 0 : i32
    %c0_i32_1 = arith.constant 0 : i32
    return %arg0, %c0_i32, %c0_i32_0 : i32, i32, i32
  }
  func.func @transform_1(%arg0: i32) -> (i32, i32) {
    %c0_i32 = arith.constant 0 : i32
    %c0_i32_0 = arith.constant 0 : i32
    %c0_i32_1 = arith.constant 0 : i32
    return %c0_i32, %c0_i32_0 : i32, i32
  }
  func.func @transform_2(%arg0: i32) -> (i32, i32) {
    %c0_i32 = arith.constant 0 : i32
    %c0_i32_0 = arith.constant 0 : i32
    %c0_i32_1 = arith.constant 0 : i32
    return %c0_i32, %c0_i32_0 : i32, i32
  }
  func.func @transform_3(%arg0: i32) -> (i32, i32, i32) {
    %c0_i32 = arith.constant 0 : i32
    %c0_i32_0 = arith.constant 0 : i32
    %c0_i32_1 = arith.constant 0 : i32
    %c0_i32_2 = arith.constant 0 : i32
    return %c0_i32, %c0_i32_0, %c0_i32_1 : i32, i32, i32
  }
  func.func @transform_4(%arg0: i32) -> (i32, i32, i32) {
    %c0_i32 = arith.constant 0 : i32
    %c0_i32_0 = arith.constant 0 : i32
    %c0_i32_1 = arith.constant 0 : i32
    %c0_i32_2 = arith.constant 0 : i32
    return %c0_i32, %c0_i32_0, %c0_i32_1 : i32, i32, i32
  }
  func.func @transform_5(%arg0: i32) -> (i32, i32, i32) {
    %c0_i32 = arith.constant 0 : i32
    %c0_i32_0 = arith.constant 0 : i32
    %c0_i32_1 = arith.constant 0 : i32
    %c0_i32_2 = arith.constant 0 : i32
    return %c0_i32, %c0_i32_0, %c0_i32_1 : i32, i32, i32
  }
  func.func @transform_6(%arg0: i32) -> (i32, i32, i32) {
    %c0_i32 = arith.constant 0 : i32
    %c0_i32_0 = arith.constant 0 : i32
    %c0_i32_1 = arith.constant 0 : i32
    %c0_i32_2 = arith.constant 0 : i32
    return %c0_i32, %c0_i32_0, %c0_i32_1 : i32, i32, i32
  }
  func.func @transform_7(%arg0: i32) -> (i32, i32) {
    %c0_i32 = arith.constant 0 : i32
    %c0_i32_0 = arith.constant 0 : i32
    %c0_i32_1 = arith.constant 0 : i32
    return %c0_i32, %c0_i32_0 : i32, i32
  }
  func.func @transform_8(%arg0: i32) -> (i32, i32) {
    %c0_i32 = arith.constant 0 : i32
    %c0_i32_0 = arith.constant 0 : i32
    %c0_i32_1 = arith.constant 0 : i32
    return %c0_i32, %c0_i32_0 : i32, i32
  }
  func.func @transform_9(%arg0: i32) -> (i32, i32) {
    %c0_i32 = arith.constant 0 : i32
    %c0_i32_0 = arith.constant 0 : i32
    %c0_i32_1 = arith.constant 0 : i32
    return %c0_i32, %c0_i32_0 : i32, i32
  }
  func.func @transform_10(%arg0: i32) -> (i32, i32) {
    %c0_i32 = arith.constant 0 : i32
    %c0_i32_0 = arith.constant 0 : i32
    %c0_i32_1 = arith.constant 0 : i32
    return %c0_i32, %c0_i32_0 : i32, i32
  }
  func.func @transform_11(%arg0: i32) -> (i32, i32, i32) {
    %c0_i32 = arith.constant 0 : i32
    %c0_i32_0 = arith.constant 0 : i32
    %c0_i32_1 = arith.constant 0 : i32
    return %arg0, %c0_i32, %c0_i32_0 : i32, i32, i32
  }
}

</mosaic_0001>

<bundles_post_ra>
// kernel: tpu_custom_call.1
= control target key start
LH: loop header
LB: loop body
LE: loop exit
PB: predicated region body
PF: predicated region fallthrough
CT: control target
= control target key end

     0   :  { %16 = vsyncpa [#allocation5], 0  ;;  %s8297_s0 = inlined_call_operand.vmem [shape: f32[2,18,4], index: 0, kind: input, shape index: {}]   ;;  %s8298_s1 = inlined_call_operand.vmem [shape: f32[4,8], index: 1, kind: input, shape index: {}]   ;;  %s8299_s2 = inlined_call_operand.vmem [shape: f32[4,32], index: 2, kind: input, shape index: {}]   ;;  %s8300_s3 = inlined_call_operand.vmem [shape: f32[5,32,8], index: 3, kind: input, shape index: {}]   ;;  %s8301_s4 = inlined_call_operand.vmem [shape: f32[5,32,32], index: 4, kind: input, shape index: {}]   ;;  %s8302_s5 = inlined_call_operand.vmem [shape: f32[54,8,32], index: 5, kind: input, shape index: {}]   ;;  %s8303_s6 = inlined_call_operand.vmem [shape: f32[6,1,32], index: 6, kind: input, shape index: {}]   ;;  %s8304_s7 = inlined_call_operand.vmem [shape: f32[4,32], index: 7, kind: input, shape index: {}]   ;;  %s8305_s8 = inlined_call_operand.vmem [shape: f32[1,32], index: 8, kind: input, shape index: {}]   ;;  %s8306_s9 = inlined_call_operand.vmem [shape: f32[1,32], index: 9, kind: input, shape index: {}]   ;;  %s8307_s10 = inlined_call_operand.vmem [shape: f32[1,32], index: 10, kind: input, shape index: {}]   ;;  %s8308_s11 = inlined_call_operand.hbm [shape: f32[2,16,32], index: 11, kind: output, shape index: {}]  }
   0x1   :  { %18 = vsyncpa [#allocation5 + $0x1], 0  ;;  %s7686_s17 = smov 0   ;;  %s7688_s18 = smov 0  }
   0x2   :  { %s7690_s19 = smov 0   ;;  %s7692_s20 = smov 0  }
   0x3 LB: > { %s7707_s21 = sadd.s32 4294967295, %s7620_s20   ;;  %s6441_s22 = sadd.s32 4294967294, %s7620_s20   ;;  %s7620_s20 = sphi %s7692_s20, %s8314_s20   ;;  %s7616_s19 = sphi %s7690_s19, %s8313_s19   ;;  %s7612_s18 = sphi %s7688_s18, %s8312_s18   ;;  %s7608_s17 = sphi %s7686_s17, %s8311_s17  }
   0x4   : > { %s7711_s23 = sadd.s32 1, %s7620_s20   ;;  %s267_s24 = sadd.s32 1, %s7616_s19 }
   0x5   : > { %s264_s25 = ssub.s32 %s7620_s20, %s7711_s23  ;;  %p277_p0 = scmp.ne.s32.totalorder %s7616_s19, %s7612_s18 }
   0x6   : > { %p265_p1 = scmp.eq.s32.totalorder %s264_s25, 0  ;;  %p278_p2 = scmp.eq.s32.totalorder %s7707_s21, 1 }
   0x7   : > { %p283_p3 = scmp.ne.s32.totalorder %s7612_s18, %s7608_s17  ;;  %p284_p4 = scmp.eq.s32.totalorder %s6441_s22, 1 }
   0x8   : > { %s7722_s26 = scalar_select %p265_p1, %s7616_s19, %s267_s24  }
   0x9   : > { %p7724_p5 = por %p278_p2, %p277_p0  ;;  %p7728_p6 = por %p284_p4, %p283_p3 }
   0xa   : > { %p6444_p7 = scmp.ge.s32.totalorder %s7620_s20, 1  ;;  %p340_p8 = scmp.lt.s32.totalorder %s7620_s20, 3 }
   0xc   : > { %p341_p9 = pnand %p6444_p7, %p340_p8 }
   0xd   : > { %v401_v0 = vld [vmem:[%s8298_s1] sm:$0xf] (!%p341_p9)  ;;  %vm410_vm0 = vcmask (!%p341_p9), 1043456   ;;  %p380_p10 = scmp.lt.s32.totalorder (!%p341_p9), %s7707_s21, 1  ;;  %vm403_vm1 = vcmask (!%p341_p9), 31744   ;;  %vm385_vm2 = vcmask (!%p341_p9), 60416  }
   0xe   : > { %344 = sbr.rel (%p341_p9) target bundleno = 3074 (0xc02), region = 64  ;;  %6920 = vmatprep.subr.msk.mxu0 (!%p341_p9), %vm410_vm0, %v401_v0  ;;  %v402_v8 = vld [vmem:[%s8299_s2] sm:$0xf] (!%p341_p9)  ;;  %v7622_v12 = vmov (!%p341_p9), 0.0   ;;  %v6456_v14 = vld [vmem:[%s8302_s5 + $0x8] sm:$0xff] (!%p341_p9)  ;;  %vm489_vm3 = vcmask (!%p341_p9), 64512  }
   0xf   : > { %6921 = vmatpush3.msk.msra.mxu0 (!%p341_p9), %vm410_vm0, %v401_v0  ;;  %6925 = vmatprep.subr.msk.mxu1 (!%p341_p9), %vm410_vm0, %v402_v8  ;;  %386 = vst.msk [vmem:[#allocation2] sm:$0xf] (!%p341_p9), %vm385_vm2, %v7622_v12  ;;  %387 = vst.msk [vmem:[#allocation2 + $0x14] sm:$0xf] (!%p341_p9), %vm385_vm2, %v7622_v12  ;;  %v585_v13 = vld [vmem:[%s8302_s5] sm:$0xff] (!%p341_p9)  ;;  %v6459_v19 = vld [vmem:[%s8302_s5 + $0x10] sm:$0xff] (!%p341_p9) }
  0x10   : > { %6926 = vmatpush3.msk.msra.mxu1 (!%p341_p9), %vm410_vm0, %v402_v8  ;;  %v6462_v22 = vld [vmem:[%s8302_s5 + $0x18] sm:$0xff] (!%p341_p9)  ;;  %v6465_v25 = vld [vmem:[%s8302_s5 + $0x20] sm:$0xff] (!%p341_p9)  ;;  %v6468_v28 = vld [vmem:[%s8302_s5 + $0x28] sm:$0xff] (!%p341_p9)  ;;  %vm388_vm4 = vcmask (!%p341_p9), 253952   ;;  %vm1367_vm5 = vcmask (!%p341_p9), 261120   ;;  %s377_s30 = sand.u32 (!%p341_p9), 1, %s7612_s18  }
  0x11   : > { %6930 = vmatprep.subr.mxu1 (!%p341_p9), %v585_v13  ;;  %v6471_v31 = vld [vmem:[%s8302_s5 + $0x30] sm:$0xff] (!%p341_p9)  ;;  %v6474_v34 = vld [vmem:[%s8302_s5 + $0x38] sm:$0xff] (!%p341_p9)  ;;  %v6477_v37 = vld [vmem:[%s8302_s5 + $0x40] sm:$0xff] (!%p341_p9)  ;;  %389 = vst.msk [vmem:[#allocation3] sm:$0x1] (!%p341_p9), %vm388_vm4, %v7622_v12  ;;  %s6445_s14 = sshll.u32 (!%p341_p9), %s377_s30, 4 }
  0x12   : > { %v1378_v39 = vld [vmem:[%s8300_s3] sm:$0xff] (!%p341_p9)  ;;  %v1379_v40 = vld [vmem:[%s8300_s3 + $0x8] sm:$0xff] (!%p341_p9)  ;;  %v1380_v44 = vld [vmem:[%s8300_s3 + $0x10] sm:$0xff] (!%p341_p9)  ;;  %390 = vst.msk [vmem:[#allocation3 + $0x11] sm:$0x1] (!%p341_p9), %vm388_vm4, %v7622_v12  ;;  %s6688_s25 = sshll.u32 (!%p341_p9), %s7707_s21, 8 }
  0x13   : > { %v7315_v41 = vpack.c.bf16 (!%p341_p9), %v1379_v40, %v1378_v39  ;;  %v1381_v45 = vld [vmem:[%s8300_s3 + $0x18] sm:$0xff] (!%p341_p9)  ;;  %v1382_v47 = vld [vmem:[%s8301_s4] sm:$0xff] (!%p341_p9)  ;;  %v1383_v48 = vld [vmem:[%s8301_s4 + $0x8] sm:$0xff] (!%p341_p9)  ;;  %s379_s29 = scalar_lea.vmem (!%p341_p9), [#allocation4], %s6445_s14  ;;  %s7623_s22 = smov (!%p341_p9), [#allocation4]  }
  0x14   : > { %v7319_v46 = vpack.c.bf16 (!%p341_p9), %v1381_v45, %v1380_v44  ;;  %v7323_v49 = vpack.c.bf16 (!%p341_p9), %v1383_v48, %v1382_v47  ;;  %v1384_v50 = vld [vmem:[%s8301_s4 + $0x10] sm:$0xff] (!%p341_p9)  ;;  %v1385_v51 = vld [vmem:[%s8301_s4 + $0x18] sm:$0xff] (!%p341_p9)  ;;  %v6450_v53 = vld [vmem:[%s8303_s6] ss:$0 sm:$0xff] (!%p341_p9)  ;;  %s7562_s24 = sshll.u32 (!%p341_p9), %s7623_s22, 4  ;;  %s7563_s24 = int_to_ptr.vmem [resolvable:$false] %s7562_s24 }
  0x15   : > { %s381_s12 = scalar_select %p380_p10, %s7707_s21, 1  ;;  %v7327_v52 = vpack.c.bf16 %v1385_v51, %v1384_v50  ;;  %v6513_v8 = vld [vmem:[%s8300_s3 + $0x20] sm:$0xff]  ;;  %v6519_v47 = vld [vmem:[%s8301_s4 + $0x30] sm:$0xff]  ;;  %v6520_v48 = vld [vmem:[%s8301_s4 + $0x38] sm:$0xff] }
  0x16   : > { %7324 = vmatprep.subr.bf16.mxu0 %v7323_v49  ;;  %v6517_v40 = vld [vmem:[%s8301_s4 + $0x20] sm:$0xff]  ;;  %v7343_v51 = vpack.c.bf16 %v6520_v48, %v6519_v47  ;;  %v6564_v48 = vld [vmem:[%s8301_s4 + $0x50] sm:$0xff]  ;;  %s8256_s21 = scalar_lea.sflag [#allocation5], %s377_s30 }
  0x17   : > { %s7515_s13 = smul.u32 24, %s381_s12  ;;  %s6379_s12 = sshll.u32 %s379_s29, 4  ;;  %s8252_s12 = int_to_ptr.vmem [resolvable:$true] %s6379_s12 }
  0x18   : > { %s7558_s14 = scalar_lea.vmem %s8252_s12, 256  ;;  %p7565_p0 = scmp.lt.s32.totalorder %s8252_s12, %s7563_s24 }
  0x19   : > { %s384_s16 = scalar_lea.vmem %s8297_s0, %s7515_s13  ;;  %p7559_p11 = scmp.ne.s32.totalorder %s8252_s12, %s7558_s14 }
  0x1a   : > { %v7744_v1 = vld [vmem:[%s384_s16 + $0x1] sm:$0xff]  ;;  %v7746_v2 = vld [vmem:[%s384_s16 + $0x9] sm:$0xff] }
  0x1b   : > { %6922 = vmatprep.mubr.msk.f32.mxu0 %vm403_vm1, %v7744_v1  ;;  %v394_v3 = vld [vmem:[%s384_s16 + $0x8] sm:$0xff]  ;;  %v393_v5 = vld [vmem:[%s384_s16] sm:$0xff]  ;;  %p7560_p12 = pnand %p7559_p11, %p7724_p5 }
  0x1c   : > { %6923 = vmatmul.mubr.msk.f32.vlgmr.msra.gmra.mrb[0].mxu0 %vm403_vm1, %v7746_v2  ;;  %v396_v4 = vmax.f32 %v7746_v2, %v394_v3  ;;  %v395_v6 = vmax.f32 %v7744_v1, %v393_v5  ;;  %v397_v7 = vld [vmem:[%s384_s16 + $0x2] sm:$0xff]  ;;  %v398_v10 = vld [vmem:[%s384_s16 + $0xa] sm:$0xff]  ;;  %s8250_s16 = scalar_lea.hbm %s8308_s11, %s6688_s25  ;;  %s7564_s25 = scalar_lea.vmem %s7563_s24, 512 }
  0x1d   : > { %7326 = vmatpush3.bf16.msra.mxu0 %v7323_v49  ;;  %p7561_p13 = pneg %p7560_p12  ;;  %p7566_p1 = scmp.lt.s32.totalorder %s7564_s25, %s7558_s14 }
  0x1e   : > { %v399_v9 = vmax.f32 %v395_v6, %v397_v7  ;;  %v400_v11 = vmax.f32 %v396_v4, %v398_v10  ;;  %7328 = vmatprep.subr.bf16.mxu0 %v7327_v52  ;;  %v6486_v6 = vld [vmem:[%s8302_s5 + $0x48] sm:$0xff]  ;;  %v6489_v7 = vld [vmem:[%s8302_s5 + $0x50] sm:$0xff] }
  0x1f   : > { %p7567_p2 = por %p7566_p1, %p7565_p0 }
  0x20   : > { %6927 = vmatprep.mubr.msk.f32.mxu1 %vm403_vm1, %v399_v9  ;;  %v6514_v9 = vld [vmem:[%s8300_s3 + $0x28] sm:$0xff] }
  0x21   : > { %6928 = vmatmul.mubr.msk.f32.vlgmr.msra.gmra.mrb[0].mxu1 %vm403_vm1, %v400_v11  ;;  %7330 = vmatpush3.bf16.msra.mxu0 %v7327_v52  ;;  %v7331_v10 = vpack.c.bf16 %v6514_v9, %v6513_v8  ;;  %p7568_p3 = pnand %p7567_p2, %p7561_p13 }
  0x22   : > { %6931 = vmatpush3.msra.mxu1 %v585_v13  ;;  %6997 = vmatprep.subr.mxu0 %v6486_v6 }
  0x23   : > { %6935 = vmatprep.subr.mxu1 %v6456_v14 }
  0xef   : > { %v6924_v15 = vpop.f32.mrb[0].mxu0 }
  0xf0   : > { %491 = vst.msk [vmem:[#allocation2 + $0xc] sm:$0xff] %vm489_vm3, %v6924_v15  ;;  %v480_v16 = vpop.f32.mrb[1].mxu0  ;;  %v6492_v15 = vld [vmem:[%s8302_s5 + $0x58] sm:$0xff] }
  0xf1   : > { %490 = vst.msk [vmem:[#allocation2 + $0x4] sm:$0xff] %vm489_vm3, %v480_v16 }
  0xf7   : > { %v931_v30 = vld [vmem:[#allocation2 + $0xc] sm:$0xff] }
  0xf8   : > { %v583_v17 = vld [vmem:[#allocation2] sm:$0xff]  ;;  %v584_v18 = vld [vmem:[#allocation2 + $0x8] sm:$0xff]  ;;  %v1279_v43 = vld [vmem:[#allocation2 + $0x10] sm:$0xff] }
  0xf9   : > { %6932 = vmatprep.mubr.msk.f32.mxu1 %vm489_vm3, %v583_v17  ;;  %v669_v20 = vld [vmem:[#allocation2 + $0x1] sm:$0xff]  ;;  %v670_v21 = vld [vmem:[#allocation2 + $0x9] sm:$0xff] }
  0xfa   : > { %6933 = vmatmul.mubr.msk.f32.vlgmr.msra.gmra.mrb[0].mxu1 %vm489_vm3, %v584_v18  ;;  %v756_v23 = vld [vmem:[#allocation2 + $0x2] sm:$0xff]  ;;  %v757_v24 = vld [vmem:[#allocation2 + $0xa] sm:$0xff] }
  0xfb   : > { %6936 = vmatpush3.msra.mxu1 %v6456_v14  ;;  %6937 = vmatprep.mubr.msk.f32.mxu1 %vm489_vm3, %v669_v20  ;;  %v843_v26 = vld [vmem:[#allocation2 + $0x3] sm:$0xff]  ;;  %v844_v27 = vld [vmem:[#allocation2 + $0xb] sm:$0xff] }
  0xfc   : > { %6940 = vmatprep.subr.mxu1 %v6459_v19  ;;  %v930_v29 = vld [vmem:[#allocation2 + $0x4] sm:$0xff]  ;;  %v1018_v33 = vld [vmem:[#allocation2 + $0xd] sm:$0xff] }
  0xfd   : > { %v1017_v32 = vld [vmem:[#allocation2 + $0x5] sm:$0xff]  ;;  %v1105_v36 = vld [vmem:[#allocation2 + $0xe] sm:$0xff] }
  0xfe   : > { %v1104_v35 = vld [vmem:[#allocation2 + $0x6] sm:$0xff]  ;;  %v1192_v42 = vld [vmem:[#allocation2 + $0xf] sm:$0xff] }
  0xff   : > { %v1191_v38 = vld [vmem:[#allocation2 + $0x7] sm:$0xff] }
 0x102   : > { %6938 = vmatmul.mubr.msk.f32.vlgmr.msra.gmra.mrb[0].mxu1 %vm489_vm3, %v670_v21  ;;  %v6498_v21 = vld [vmem:[%s8302_s5 + $0x68] sm:$0xff] }
 0x103   : > { %6941 = vmatpush3.msra.mxu1 %v6459_v19  ;;  %6942 = vmatprep.mubr.msk.f32.mxu1 %vm489_vm3, %v756_v23 }
 0x104   : > { %6945 = vmatprep.subr.mxu1 %v6462_v22 }
 0x10a   : > { %6943 = vmatmul.mubr.msk.f32.vlgmr.msra.gmra.mrb[0].mxu1 %vm489_vm3, %v757_v24  ;;  %v6501_v24 = vld [vmem:[%s8302_s5 + $0x70] sm:$0xff] }
 0x10b   : > { %6946 = vmatpush3.msra.mxu1 %v6462_v22  ;;  %6947 = vmatprep.mubr.msk.f32.mxu1 %vm489_vm3, %v843_v26 }
 0x10c   : > { %6950 = vmatprep.subr.mxu1 %v6465_v25 }
 0x112   : > { %6948 = vmatmul.mubr.msk.f32.vlgmr.msra.gmra.mrb[0].mxu1 %vm489_vm3, %v844_v27  ;;  %v6504_v27 = vld [vmem:[%s8302_s5 + $0x78] sm:$0xff] }
 0x113   : > { %6951 = vmatpush3.msra.mxu1 %v6465_v25  ;;  %6952 = vmatprep.mubr.msk.f32.mxu1 %vm489_vm3, %v930_v29 }
 0x114   : > { %6955 = vmatprep.subr.mxu1 %v6468_v28 }
 0x11a   : > { %6953 = vmatmul.mubr.msk.f32.vlgmr.msra.gmra.mrb[0].mxu1 %vm489_vm3, %v931_v30  ;;  %v6507_v30 = vld [vmem:[%s8302_s5 + $0x80] sm:$0xff] }
 0x11b   : > { %6956 = vmatpush3.msra.mxu1 %v6468_v28  ;;  %6957 = vmatprep.mubr.msk.f32.mxu1 %vm489_vm3, %v1017_v32 }
 0x11c   : > { %6960 = vmatprep.subr.mxu1 %v6471_v31 }
 0x122   : > { %6958 = vmatmul.mubr.msk.f32.vlgmr.msra.gmra.mrb[0].mxu1 %vm489_vm3, %v1018_v33  ;;  %v6510_v33 = vld [vmem:[%s8302_s5 + $0x88] sm:$0xff] }
 0x123   : > { %6961 = vmatpush3.msra.mxu1 %v6471_v31  ;;  %6962 = vmatprep.mubr.msk.f32.mxu1 %vm489_vm3, %v1104_v35 }
 0x124   : > { %6965 = vmatprep.subr.mxu1 %v6474_v34 }
 0x12a   : > { %6963 = vmatmul.mubr.msk.f32.vlgmr.msra.gmra.mrb[0].mxu1 %vm489_vm3, %v1105_v36 }
 0x12b   : > { %6966 = vmatpush3.msra.mxu1 %v6474_v34  ;;  %6967 = vmatprep.mubr.msk.f32.mxu1 %vm489_vm3, %v1191_v38  ;;  %v6516_v38 = vld [vmem:[%s8300_s3 + $0x38] sm:$0xff] }
 0x12c   : > { %6970 = vmatprep.subr.mxu1 %v6477_v37 }
 0x132   : > { %6968 = vmatmul.mubr.msk.f32.vlgmr.msra.gmra.mrb[0].mxu1 %vm489_vm3, %v1192_v42  ;;  %v6483_v42 = vld [vmem:[%s8303_s6 + $0x1] ss:$0 sm:$0xff] }
 0x133   : > { %6971 = vmatpush3.msra.mxu1 %v6477_v37  ;;  %6972 = vmatprep.mubr.msk.f32.mxu1 %vm489_vm3, %v584_v18  ;;  %v6495_v18 = vld [vmem:[%s8302_s5 + $0x60] sm:$0xff]  ;;  %v6515_v37 = vld [vmem:[%s8300_s3 + $0x30] sm:$0xff] }
 0x134   : > { %7316 = vmatprep.subr.bf16.mxu1 %v7315_v41  ;;  %v7335_v39 = vpack.c.bf16 %v6516_v38, %v6515_v37  ;;  %v6524_v37 = vld [vmem:[%s8303_s6 + $0x2] ss:$0 sm:$0xff]  ;;  %v6554_v38 = vld [vmem:[%s8305_s8] ss:$0 sm:$0xff] }
 0x13a   : > { %6973 = vmatmul.mubr.msk.f32.vlgmr.msra.gmra.mrb[0].mxu1 %vm489_vm3, %v1279_v43 }
 0x13b   : > { %7318 = vmatpush3.bf16.msra.mxu1 %v7315_v41  ;;  %v6518_v41 = vld [vmem:[%s8301_s4 + $0x28] sm:$0xff] }
 0x13c   : > { %7320 = vmatprep.subr.bf16.mxu1 %v7319_v46 }
 0x13f   : > { %7322 = vmatpush3.bf16.msra.mxu1 %v7319_v46 }
 0x140   : > { %7332 = vmatprep.subr.bf16.mxu1 %v7331_v10 }
 0x20d   : > { %v6974_v54 = vpop.f32.mrb[0].mxu1 }
 0x20e   : > { %v7395_v55 = vadd.f32 %v6974_v54, %v6450_v53  ;;  %v1354_v56 = vpop.f32.mrb[1].mxu1 }
 0x20f   : > { %v7396_v57 = vadd.f32 %v6450_v53, %v1354_v56 }
 0x210   : > { %v1366_v58 = vmax.f32 %v7395_v55, 0.0 }
 0x211   : > { %v1365_v59 = vmax.f32 %v7396_v57, 0.0 }
 0x212   : > { %1369 = vst.msk [vmem:[#allocation3 + $0x9] sm:$0xff] %vm1367_vm5, %v1366_v58 }
 0x213   : > { %1368 = vst.msk [vmem:[#allocation3 + $0x1] sm:$0xff] %vm1367_vm5, %v1365_v59  ;;  %6983 = vmatprep.mubr.msk.f32.mxu1 %vm1367_vm5, %v1365_v59 }
 0x214   : > { %6984 = vmatmul.mubr.msk.f32.vlgmr.msra.gmra.mrb[2].mxu1 %vm1367_vm5, %v1366_v58 }
 0x215   : > { %7334 = vmatpush3.bf16.msra.mxu1 %v7331_v10  ;;  %v6539_v10 = vld [vmem:[%s8302_s5 + $0xb0] sm:$0xff] }
 0x216   : > { %7336 = vmatprep.subr.bf16.mxu1 %v7335_v39 }
 0x219   : > { %v1375_v3 = vld [vmem:[#allocation3 + $0xa] sm:$0xff]  ;;  %7338 = vmatpush3.bf16.msra.mxu1 %v7335_v39 }
 0x21a   : > { %v1370_v60 = vld [vmem:[#allocation3] sm:$0xff]  ;;  %v1371_v61 = vld [vmem:[#allocation3 + $0x8] sm:$0xff] }
 0x21b   : > { %v1372_v62 = vmax.f32 %v1365_v59, %v1370_v60  ;;  %v1373_v63 = vmax.f32 %v1366_v58, %v1371_v61  ;;  %v1374_v0 = vld [vmem:[#allocation3 + $0x2] sm:$0xff]  ;;  %v6527_v60 = vld [vmem:[%s8302_s5 + $0x90] sm:$0xff] }
 0x21c   : > { %v6530_v61 = vld [vmem:[%s8302_s5 + $0x98] sm:$0xff] }
 0x21d   : > { %v1376_v4 = vmax.f32 %v1372_v62, %v1374_v0  ;;  %v1377_v5 = vmax.f32 %v1373_v63, %v1375_v3  ;;  %v3320_v62 = vld [vmem:[%s8304_s7] sm:$0xf] }
 0x21f   : > { %6994 = vmatprep.mubr.msk.f32.mxu0 %vm1367_vm5, %v1376_v4 }
 0x220   : > { %6995 = vmatmul.mubr.msk.f32.vlgmr.msra.gmra.mrb[2].mxu0 %vm1367_vm5, %v1377_v5  ;;  %v6533_v5 = vld [vmem:[%s8302_s5 + $0xa0] sm:$0xff] }
 0x221   : > { %6998 = vmatpush3.msra.mxu0 %v6486_v6 }
 0x222   : > { %7002 = vmatprep.subr.mxu0 %v6489_v7 }
 0x2e7   : > { %v6985_v11 = vpop.f32.mrb[2].mxu1 }
 0x2e8   : > { %1468 = vst.msk [vmem:[#allocation2 + $0xc] sm:$0xff] %vm489_vm3, %v6985_v11  ;;  %v1458_v12 = vpop.f32.mrb[3].mxu1 }
 0x2e9   : > { %1467 = vst.msk [vmem:[#allocation2 + $0x4] sm:$0xff] %vm489_vm3, %v1458_v12 }
 0x2ef   : > { %v1907_v26 = vld [vmem:[#allocation2 + $0xc] sm:$0xff] }
 0x2f0   : > { %v1558_v13 = vld [vmem:[#allocation2] sm:$0xff]  ;;  %v1559_v14 = vld [vmem:[#allocation2 + $0x8] sm:$0xff]  ;;  %v2255_v36 = vld [vmem:[#allocation2 + $0x10] sm:$0xff] }
 0x2f1   : > { %6999 = vmatprep.mubr.msk.f32.mxu0 %vm489_vm3, %v1558_v13  ;;  %v1645_v16 = vld [vmem:[#allocation2 + $0x1] sm:$0xff]  ;;  %v1646_v17 = vld [vmem:[#allocation2 + $0x9] sm:$0xff]  ;;  %v6542_v13 = vld [vmem:[%s8302_s5 + $0xb8] sm:$0xff] }
 0x2f2   : > { %7000 = vmatmul.mubr.msk.f32.vlgmr.msra.gmra.mrb[2].mxu0 %vm489_vm3, %v1559_v14  ;;  %v1732_v19 = vld [vmem:[#allocation2 + $0x2] sm:$0xff]  ;;  %v1733_v20 = vld [vmem:[#allocation2 + $0xa] sm:$0xff] }
 0x2f3   : > { %7003 = vmatpush3.msra.mxu0 %v6489_v7  ;;  %7004 = vmatprep.mubr.msk.f32.mxu0 %vm489_vm3, %v1645_v16  ;;  %v1819_v22 = vld [vmem:[#allocation2 + $0x3] sm:$0xff]  ;;  %v1820_v23 = vld [vmem:[#allocation2 + $0xb] sm:$0xff] }
 0x2f4   : > { %7007 = vmatprep.subr.mxu0 %v6492_v15  ;;  %v1906_v25 = vld [vmem:[#allocation2 + $0x4] sm:$0xff]  ;;  %v1994_v29 = vld [vmem:[#allocation2 + $0xd] sm:$0xff] }
 0x2f5   : > { %v1993_v28 = vld [vmem:[#allocation2 + $0x5] sm:$0xff]  ;;  %v2081_v32 = vld [vmem:[#allocation2 + $0xe] sm:$0xff] }
 0x2f6   : > { %v2080_v31 = vld [vmem:[#allocation2 + $0x6] sm:$0xff]  ;;  %v2168_v35 = vld [vmem:[#allocation2 + $0xf] sm:$0xff] }
 0x2f7   : > { %v2167_v34 = vld [vmem:[#allocation2 + $0x7] sm:$0xff] }
 0x2f8   : > { %v6536_v7 = vld [vmem:[%s8302_s5 + $0xa8] sm:$0xff]  ;;  %v6545_v16 = vld [vmem:[%s8302_s5 + $0xc0] sm:$0xff] }
 0x2fa   : > { %7005 = vmatmul.mubr.msk.f32.vlgmr.msra.gmra.mrb[2].mxu0 %vm489_vm3, %v1646_v17 }
 0x2fb   : > { %7008 = vmatpush3.msra.mxu0 %v6492_v15  ;;  %7009 = vmatprep.mubr.msk.f32.mxu0 %vm489_vm3, %v1732_v19  ;;  %v6548_v19 = vld [vmem:[%s8302_s5 + $0xc8] sm:$0xff] }
 0x2fc   : > { %7012 = vmatprep.subr.mxu0 %v6495_v18 }
 0x302   : > { %7010 = vmatmul.mubr.msk.f32.vlgmr.msra.gmra.mrb[2].mxu0 %vm489_vm3, %v1733_v20 }
 0x303   : > { %7013 = vmatpush3.msra.mxu0 %v6495_v18  ;;  %7014 = vmatprep.mubr.msk.f32.mxu0 %vm489_vm3, %v1819_v22  ;;  %v6551_v22 = vld [vmem:[%s8302_s5 + $0xd0] sm:$0xff] }
 0x304   : > { %7017 = vmatprep.subr.mxu0 %v6498_v21 }
 0x30a   : > { %7015 = vmatmul.mubr.msk.f32.vlgmr.msra.gmra.mrb[2].mxu0 %vm489_vm3, %v1820_v23 }
 0x30b   : > { %7018 = vmatpush3.msra.mxu0 %v6498_v21  ;;  %7019 = vmatprep.mubr.msk.f32.mxu0 %vm489_vm3, %v1906_v25 }
 0x30c   : > { %7022 = vmatprep.subr.mxu0 %v6501_v24 }
 0x312   : > { %7020 = vmatmul.mubr.msk.f32.vlgmr.msra.gmra.mrb[2].mxu0 %vm489_vm3, %v1907_v26 }
 0x313   : > { %7023 = vmatpush3.msra.mxu0 %v6501_v24  ;;  %7024 = vmatprep.mubr.msk.f32.mxu0 %vm489_vm3, %v1993_v28  ;;  %v6559_v28 = vld [vmem:[%s8300_s3 + $0x48] sm:$0xff] }
 0x314   : > { %7027 = vmatprep.subr.mxu0 %v6504_v27 }
 0x31a   : > { %7025 = vmatmul.mubr.msk.f32.vlgmr.msra.gmra.mrb[2].mxu0 %vm489_vm3, %v1994_v29 }
 0x31b   : > { %7028 = vmatpush3.msra.mxu0 %v6504_v27  ;;  %7029 = vmatprep.mubr.msk.f32.mxu0 %vm489_vm3, %v2080_v31  ;;  %v6558_v27 = vld [vmem:[%s8300_s3 + $0x40] sm:$0xff]  ;;  %v6560_v31 = vld [vmem:[%s8300_s3 + $0x50] sm:$0xff] }
 0x31c   : > { %7032 = vmatprep.subr.mxu0 %v6507_v30  ;;  %v7347_v29 = vpack.c.bf16 %v6559_v28, %v6558_v27 }
 0x322   : > { %7030 = vmatmul.mubr.msk.f32.vlgmr.msra.gmra.mrb[2].mxu0 %vm489_vm3, %v2081_v32  ;;  %v6561_v32 = vld [vmem:[%s8300_s3 + $0x58] sm:$0xff] }
 0x323   : > { %7033 = vmatpush3.msra.mxu0 %v6507_v30  ;;  %7034 = vmatprep.mubr.msk.f32.mxu0 %vm489_vm3, %v2167_v34  ;;  %v6562_v34 = vld [vmem:[%s8301_s4 + $0x40] sm:$0xff] }
 0x324   : > { %7037 = vmatprep.subr.mxu0 %v6510_v33 }
 0x32a   : > { %7035 = vmatmul.mubr.msk.f32.vlgmr.msra.gmra.mrb[2].mxu0 %vm489_vm3, %v2168_v35  ;;  %v6563_v35 = vld [vmem:[%s8301_s4 + $0x48] sm:$0xff] }
 0x32b   : > { %7038 = vmatpush3.msra.mxu0 %v6510_v33  ;;  %7039 = vmatprep.mubr.msk.f32.mxu0 %vm489_vm3, %v1559_v14  ;;  %v7351_v33 = vpack.c.bf16 %v6561_v32, %v6560_v31  ;;  %v6603_v32 = vld [vmem:[%s8301_s4 + $0x60] sm:$0xff] }
 0x32c   : > { %7109 = vmatprep.subr.msk.mxu0 %vm410_vm0, %v3320_v62 }
 0x332   : > { %7040 = vmatmul.mubr.msk.f32.vlgmr.msra.gmra.mrb[2].mxu0 %vm489_vm3, %v2255_v36  ;;  %v7355_v36 = vpack.c.bf16 %v6563_v35, %v6562_v34  ;;  %v6569_v35 = vld [vmem:[%s8303_s6 + $0x3] ss:$0 sm:$0xff] }
 0x333   : > { %7111 = vmatprep.mubr.msk.f32.mxu0 %vm403_vm1, %v7744_v1  ;;  %v7339_v1 = vpack.c.bf16 %v6518_v41, %v6517_v40  ;;  %7110 = vmatpush3.msk.msra.mxu0 %vm410_vm0, %v3320_v62  ;;  %v6575_v62 = vld [vmem:[%s8302_s5 + $0xe0] sm:$0xff] }
 0x334   : > { %7348 = vmatprep.subr.bf16.mxu0 %v7347_v29 }
 0x335   : > { %7340 = vmatprep.subr.bf16.mxu1 %v7339_v1 }
 0x336   : > { %7112 = vmatmul.mubr.msk.f32.vlgmr.msra.gmra.mrb[4].mxu0 %vm403_vm1, %v7746_v2 }
 0x337   : > { %7350 = vmatpush3.bf16.msra.mxu0 %v7347_v29  ;;  %v6601_v29 = vld [vmem:[%s8300_s3 + $0x70] sm:$0xff] }
 0x338   : > { %7352 = vmatprep.subr.bf16.mxu0 %v7351_v33 }
 0x33b   : > { %7354 = vmatpush3.bf16.msra.mxu0 %v7351_v33  ;;  %v6604_v33 = vld [vmem:[%s8301_s4 + $0x68] sm:$0xff] }
 0x33c   : > { %7356 = vmatprep.subr.bf16.mxu0 %v7355_v36  ;;  %v7371_v34 = vpack.c.bf16 %v6604_v33, %v6603_v32  ;;  %v6646_v33 = vld [vmem:[%s8301_s4 + $0x90] sm:$0xff] }
 0x405   : > { %v7041_v43 = vpop.f32.mrb[2].mxu0 }
 0x406   : > { %v7397_v44 = vadd.f32 %v7041_v43, %v6483_v42  ;;  %v2330_v45 = vpop.f32.mrb[3].mxu0 }
 0x407   : > { %v7398_v46 = vadd.f32 %v6483_v42, %v2330_v45 }
 0x408   : > { %v2342_v49 = vmax.f32 %v7397_v44, 0.0 }
 0x409   : > { %v2341_v50 = vmax.f32 %v7398_v46, 0.0  ;;  %v7113_v26 = vpop.f32.mrb[4].mxu0 }
 0x40a   : > { %2344 = vst.msk [vmem:[#allocation3 + $0x9] sm:$0xff] %vm1367_vm5, %v2342_v49  ;;  %v3397_v30 = vpop.f32.mrb[5].mxu0 }
 0x40b   : > { %2343 = vst.msk [vmem:[#allocation3 + $0x1] sm:$0xff] %vm1367_vm5, %v2341_v50  ;;  %7050 = vmatprep.mubr.msk.f32.mxu1 %vm1367_vm5, %v2341_v50  ;;  %v3398_v43 = vadd.f32 %v6554_v38, %v3397_v30  ;;  %v6602_v30 = vld [vmem:[%s8300_s3 + $0x78] sm:$0xff] }
 0x40c   : > { %7051 = vmatmul.mubr.msk.f32.vlgmr.msra.gmra.mrb[4].mxu1 %vm1367_vm5, %v2342_v49  ;;  %v7367_v31 = vpack.c.bf16 %v6602_v30, %v6601_v29 }
 0x40d   : > { %7342 = vmatpush3.bf16.msra.mxu1 %v7339_v1  ;;  %v3403_v1 = vadd.f32 %v7113_v26, %v6554_v38 }
 0x40e   : > { %7344 = vmatprep.subr.bf16.mxu1 %v7343_v51 }
 0x411   : > { %7346 = vmatpush3.bf16.msra.mxu1 %v7343_v51  ;;  %v2350_v57 = vld [vmem:[#allocation3 + $0xa] sm:$0xff] }
 0x412   : > { %v2345_v52 = vld [vmem:[#allocation3] sm:$0xff]  ;;  %v2346_v53 = vld [vmem:[#allocation3 + $0x8] sm:$0xff]  ;;  %7064 = vmatprep.subr.mxu1 %v6527_v60 }
 0x413   : > { %v2347_v54 = vmax.f32 %v2341_v50, %v2345_v52  ;;  %v2348_v55 = vmax.f32 %v2342_v49, %v2346_v53  ;;  %v2349_v56 = vld [vmem:[#allocation3 + $0x2] sm:$0xff] }
 0x414   : > { %v6565_v49 = vld [vmem:[%s8301_s4 + $0x58] sm:$0xff] }
 0x415   : > { %v2351_v58 = vmax.f32 %v2347_v54, %v2349_v56  ;;  %v2352_v59 = vmax.f32 %v2348_v55, %v2350_v57  ;;  %v7359_v52 = vpack.c.bf16 %v6565_v49, %v6564_v48 }
 0x417   : > { %7061 = vmatprep.mubr.msk.f32.mxu1 %vm1367_vm5, %v2351_v58 }
 0x418   : > { %7062 = vmatmul.mubr.msk.f32.vlgmr.msra.gmra.mrb[6].mxu1 %vm1367_vm5, %v2352_v59 }
 0x419   : > { %7065 = vmatpush3.msra.mxu1 %v6527_v60 }
 0x41a   : > { %7069 = vmatprep.subr.mxu1 %v6530_v61 }
 0x4df   : > { %v7052_v63 = vpop.f32.mrb[4].mxu1 }
 0x4e0   : > { %2445 = vst.msk [vmem:[#allocation2 + $0xc] sm:$0xff] %vm489_vm3, %v7052_v63  ;;  %v2435_v0 = vpop.f32.mrb[5].mxu1  ;;  %v6599_v63 = vld [vmem:[%s8300_s3 + $0x60] sm:$0xff] }
 0x4e1   : > { %2444 = vst.msk [vmem:[#allocation2 + $0x4] sm:$0xff] %vm489_vm3, %v2435_v0  ;;  %v6600_v0 = vld [vmem:[%s8300_s3 + $0x68] sm:$0xff] }
 0x4e7   : > { %v2884_v15 = vld [vmem:[#allocation2 + $0xc] sm:$0xff] }
 0x4e8   : > { %v2535_v3 = vld [vmem:[#allocation2] sm:$0xff]  ;;  %v2536_v4 = vld [vmem:[#allocation2 + $0x8] sm:$0xff]  ;;  %v3232_v25 = vld [vmem:[#allocation2 + $0x10] sm:$0xff] }
 0x4e9   : > { %7066 = vmatprep.mubr.msk.f32.mxu1 %vm489_vm3, %v2535_v3  ;;  %v2622_v6 = vld [vmem:[#allocation2 + $0x1] sm:$0xff]  ;;  %v2623_v2 = vld [vmem:[#allocation2 + $0x9] sm:$0xff]  ;;  %v7363_v3 = vpack.c.bf16 %v6600_v0, %v6599_v63 }
 0x4ea   : > { %7067 = vmatmul.mubr.msk.f32.vlgmr.msra.gmra.mrb[6].mxu1 %vm489_vm3, %v2536_v4  ;;  %v2709_v8 = vld [vmem:[#allocation2 + $0x2] sm:$0xff]  ;;  %v2710_v9 = vld [vmem:[#allocation2 + $0xa] sm:$0xff] }
 0x4eb   : > { %7070 = vmatpush3.msra.mxu1 %v6530_v61  ;;  %7071 = vmatprep.mubr.msk.f32.mxu1 %vm489_vm3, %v2622_v6  ;;  %v2796_v11 = vld [vmem:[#allocation2 + $0x3] sm:$0xff]  ;;  %v2797_v12 = vld [vmem:[#allocation2 + $0xb] sm:$0xff]  ;;  %v6572_v61 = vld [vmem:[%s8302_s5 + $0xd8] sm:$0xff] }
 0x4ec   : > { %7074 = vmatprep.subr.mxu1 %v6533_v5  ;;  %v2883_v14 = vld [vmem:[#allocation2 + $0x4] sm:$0xff]  ;;  %v2971_v18 = vld [vmem:[#allocation2 + $0xd] sm:$0xff] }
 0x4ed   : > { %v2970_v17 = vld [vmem:[#allocation2 + $0x5] sm:$0xff]  ;;  %v3058_v21 = vld [vmem:[#allocation2 + $0xe] sm:$0xff] }
 0x4ee   : > { %v3057_v20 = vld [vmem:[#allocation2 + $0x6] sm:$0xff]  ;;  %v3145_v24 = vld [vmem:[#allocation2 + $0xf] sm:$0xff] }
 0x4ef   : > { %v3144_v23 = vld [vmem:[#allocation2 + $0x7] sm:$0xff]  ;;  %v6619_v63 = vld [vmem:[%s8302_s5 + $0x130] sm:$0xff] }
 0x4f2   : > { %7072 = vmatmul.mubr.msk.f32.vlgmr.msra.gmra.mrb[6].mxu1 %vm489_vm3, %v2623_v2 }
 0x4f3   : > { %7075 = vmatpush3.msra.mxu1 %v6533_v5  ;;  %7076 = vmatprep.mubr.msk.f32.mxu1 %vm489_vm3, %v2709_v8 }
 0x4f4   : > { %7079 = vmatprep.subr.mxu1 %v6536_v7 }
 0x4fa   : > { %7077 = vmatmul.mubr.msk.f32.vlgmr.msra.gmra.mrb[6].mxu1 %vm489_vm3, %v2710_v9 }
 0x4fb   : > { %7080 = vmatpush3.msra.mxu1 %v6536_v7  ;;  %7081 = vmatprep.mubr.msk.f32.mxu1 %vm489_vm3, %v2796_v11  ;;  %v6578_v7 = vld [vmem:[%s8302_s5 + $0xe8] sm:$0xff] }
 0x4fc   : > { %7084 = vmatprep.subr.mxu1 %v6539_v10 }
 0x502   : > { %7082 = vmatmul.mubr.msk.f32.vlgmr.msra.gmra.mrb[6].mxu1 %vm489_vm3, %v2797_v12 }
 0x503   : > { %7085 = vmatpush3.msra.mxu1 %v6539_v10  ;;  %7086 = vmatprep.mubr.msk.f32.mxu1 %vm489_vm3, %v2883_v14  ;;  %v6581_v10 = vld [vmem:[%s8302_s5 + $0xf0] sm:$0xff] }
 0x504   : > { %7089 = vmatprep.subr.mxu1 %v6542_v13 }
 0x50a   : > { %7087 = vmatmul.mubr.msk.f32.vlgmr.msra.gmra.mrb[6].mxu1 %vm489_vm3, %v2884_v15 }
 0x50b   : > { %7090 = vmatpush3.msra.mxu1 %v6542_v13  ;;  %7091 = vmatprep.mubr.msk.f32.mxu1 %vm489_vm3, %v2970_v17  ;;  %v6584_v13 = vld [vmem:[%s8302_s5 + $0xf8] sm:$0xff] }
 0x50c   : > { %7094 = vmatprep.subr.mxu1 %v6545_v16 }
 0x512   : > { %7092 = vmatmul.mubr.msk.f32.vlgmr.msra.gmra.mrb[6].mxu1 %vm489_vm3, %v2971_v18 }
 0x513   : > { %7095 = vmatpush3.msra.mxu1 %v6545_v16  ;;  %7096 = vmatprep.mubr.msk.f32.mxu1 %vm489_vm3, %v3057_v20  ;;  %v6587_v16 = vld [vmem:[%s8302_s5 + $0x100] sm:$0xff] }
 0x514   : > { %7099 = vmatprep.subr.mxu1 %v6548_v19 }
 0x51a   : > { %7097 = vmatmul.mubr.msk.f32.vlgmr.msra.gmra.mrb[6].mxu1 %vm489_vm3, %v3058_v21 }
 0x51b   : > { %7100 = vmatpush3.msra.mxu1 %v6548_v19  ;;  %7101 = vmatprep.mubr.msk.f32.mxu1 %vm489_vm3, %v3144_v23  ;;  %v6590_v19 = vld [vmem:[%s8302_s5 + $0x108] sm:$0xff] }
 0x51c   : > { %7104 = vmatprep.subr.mxu1 %v6551_v22 }
 0x522   : > { %7102 = vmatmul.mubr.msk.f32.vlgmr.msra.gmra.mrb[6].mxu1 %vm489_vm3, %v3145_v24 }
 0x523   : > { %7105 = vmatpush3.msra.mxu1 %v6551_v22  ;;  %7106 = vmatprep.mubr.msk.f32.mxu1 %vm489_vm3, %v2536_v4  ;;  %v6593_v22 = vld [vmem:[%s8302_s5 + $0x110] sm:$0xff] }
 0x524   : > { %7364 = vmatprep.subr.bf16.mxu1 %v7363_v3 }
 0x52a   : > { %7107 = vmatmul.mubr.msk.f32.vlgmr.msra.gmra.mrb[6].mxu1 %vm489_vm3, %v3232_v25  ;;  %v6596_v25 = vld [vmem:[%s8302_s5 + $0x118] sm:$0xff] }
 0x52b   : > { %7366 = vmatpush3.bf16.msra.mxu1 %v7363_v3 }
 0x52c   : > { %7368 = vmatprep.subr.bf16.mxu1 %v7367_v31 }
 0x52f   : > { %7370 = vmatpush3.bf16.msra.mxu1 %v7367_v31 }
 0x530   : > { %7372 = vmatprep.subr.bf16.mxu1 %v7371_v34 }
 0x5fd   : > { %v7108_v39 = vpop.f32.mrb[6].mxu1 }
 0x5fe   : > { %v7399_v40 = vadd.f32 %v7108_v39, %v6524_v37  ;;  %v3307_v41 = vpop.f32.mrb[7].mxu1 }
 0x5ff   : > { %v7400_v42 = vadd.f32 %v6524_v37, %v3307_v41  ;;  %v6606_v41 = vld [vmem:[%s8301_s4 + $0x78] sm:$0xff] }
 0x600   : > { %v3319_v44 = vmax.f32 %v7399_v40, 0.0  ;;  %v6605_v40 = vld [vmem:[%s8301_s4 + $0x70] sm:$0xff] }
 0x601   : > { %v3318_v45 = vmax.f32 %v7400_v42, 0.0 }
 0x602   : > { %v3407_v46 = vadd.f32 %v3403_v1, %v3319_v44 }
 0x603   : > { %v3406_v47 = vadd.f32 %v3398_v43, %v3318_v45  ;;  %v7375_v43 = vpack.c.bf16 %v6606_v41, %v6605_v40 }
 0x604   : > { %v8011_v50 = vmax.f32 %v3407_v46, 0.0 }
 0x605   : > { %v8013_v51 = vmax.f32 %v3406_v47, 0.0 }
 0x606   : > { %3411 = vst.msk [vmem:[#allocation3 + $0x9] sm:$0xff] %vm1367_vm5, %v8011_v50 }
 0x607   : > { %3410 = vst.msk [vmem:[#allocation3 + $0x1] sm:$0xff] %vm1367_vm5, %v8013_v51  ;;  %7122 = vmatprep.mubr.msk.f32.mxu0 %vm1367_vm5, %v8013_v51 }
 0x608   : > { %7123 = vmatmul.mubr.msk.f32.vlgmr.msra.gmra.mrb[6].mxu0 %vm1367_vm5, %v8011_v50 }
 0x609   : > { %7358 = vmatpush3.bf16.msra.mxu0 %v7355_v36 }
 0x60a   : > { %7360 = vmatprep.subr.bf16.mxu0 %v7359_v52 }
 0x60d   : > { %7362 = vmatpush3.bf16.msra.mxu0 %v7359_v52  ;;  %v3417_v58 = vld [vmem:[#allocation3 + $0xa] sm:$0xff] }
 0x60e   : > { %v3412_v53 = vld [vmem:[#allocation3] sm:$0xff]  ;;  %v3413_v54 = vld [vmem:[#allocation3 + $0x8] sm:$0xff]  ;;  %7136 = vmatprep.subr.mxu0 %v6572_v61 }
 0x60f   : > { %v3414_v55 = vmax.f32 %v8013_v51, %v3412_v53  ;;  %v3415_v56 = vmax.f32 %v8011_v50, %v3413_v54  ;;  %v3416_v57 = vld [vmem:[#allocation3 + $0x2] sm:$0xff] }
 0x610   : > { %v6613_v54 = vld [vmem:[%s8302_s5 + $0x120] sm:$0xff] }
 0x611   : > { %v3418_v59 = vmax.f32 %v3414_v55, %v3416_v57  ;;  %v3419_v60 = vmax.f32 %v3415_v56, %v3417_v58  ;;  %v6616_v55 = vld [vmem:[%s8302_s5 + $0x128] sm:$0xff]  ;;  %v6640_v56 = vld [vmem:[%s8300_s3 + $0x80] sm:$0xff] }
 0x612   : > { %v6641_v57 = vld [vmem:[%s8300_s3 + $0x88] sm:$0xff] }
 0x613   : > { %7133 = vmatprep.mubr.msk.f32.mxu0 %vm1367_vm5, %v3418_v59  ;;  %v7379_v58 = vpack.c.bf16 %v6641_v57, %v6640_v56  ;;  %v6663_v56 = vld [vmem:[%s8302_s5 + $0x180] sm:$0xff] }
 0x614   : > { %7134 = vmatmul.mubr.msk.f32.vlgmr.msra.gmra.mrb[8].mxu0 %vm1367_vm5, %v3419_v60 }
 0x615   : > { %7137 = vmatpush3.msra.mxu0 %v6572_v61 }
 0x616   : > { %7141 = vmatprep.subr.mxu0 %v6575_v62 }
 0x6db   : > { %v7124_v4 = vpop.f32.mrb[6].mxu0 }
 0x6dc   : > { %3512 = vst.msk [vmem:[#allocation2 + $0xc] sm:$0xff] %vm489_vm3, %v7124_v4  ;;  %v3502_v5 = vpop.f32.mrb[7].mxu0  ;;  %v6622_v4 = vld [vmem:[%s8302_s5 + $0x138] sm:$0xff] }
 0x6dd   : > { %3511 = vst.msk [vmem:[#allocation2 + $0x4] sm:$0xff] %vm489_vm3, %v3502_v5 }
 0x6e3   : > { %v3951_v18 = vld [vmem:[#allocation2 + $0xc] sm:$0xff] }
 0x6e4   : > { %v3602_v6 = vld [vmem:[#allocation2] sm:$0xff]  ;;  %v3603_v2 = vld [vmem:[#allocation2 + $0x8] sm:$0xff]  ;;  %v4299_v28 = vld [vmem:[#allocation2 + $0x10] sm:$0xff] }
 0x6e5   : > { %7138 = vmatprep.mubr.msk.f32.mxu0 %vm489_vm3, %v3602_v6  ;;  %v3689_v8 = vld [vmem:[#allocation2 + $0x1] sm:$0xff]  ;;  %v3690_v9 = vld [vmem:[#allocation2 + $0x9] sm:$0xff] }
 0x6e6   : > { %7139 = vmatmul.mubr.msk.f32.vlgmr.msra.gmra.mrb[8].mxu0 %vm489_vm3, %v3603_v2  ;;  %v3776_v11 = vld [vmem:[#allocation2 + $0x2] sm:$0xff]  ;;  %v3777_v12 = vld [vmem:[#allocation2 + $0xa] sm:$0xff] }
 0x6e7   : > { %7142 = vmatpush3.msra.mxu0 %v6575_v62  ;;  %7143 = vmatprep.mubr.msk.f32.mxu0 %vm489_vm3, %v3689_v8  ;;  %v3863_v14 = vld [vmem:[#allocation2 + $0x3] sm:$0xff]  ;;  %v3864_v15 = vld [vmem:[#allocation2 + $0xb] sm:$0xff] }
 0x6e8   : > { %7146 = vmatprep.subr.mxu0 %v6578_v7  ;;  %v3950_v17 = vld [vmem:[#allocation2 + $0x4] sm:$0xff]  ;;  %v4038_v21 = vld [vmem:[#allocation2 + $0xd] sm:$0xff] }
 0x6e9   : > { %v4037_v20 = vld [vmem:[#allocation2 + $0x5] sm:$0xff]  ;;  %v4125_v24 = vld [vmem:[#allocation2 + $0xe] sm:$0xff] }
 0x6ea   : > { %v4124_v23 = vld [vmem:[#allocation2 + $0x6] sm:$0xff]  ;;  %v4212_v27 = vld [vmem:[#allocation2 + $0xf] sm:$0xff] }
 0x6eb   : > { %v4211_v26 = vld [vmem:[#allocation2 + $0x7] sm:$0xff] }
 0x6ee   : > { %7144 = vmatmul.mubr.msk.f32.vlgmr.msra.gmra.mrb[8].mxu0 %vm489_vm3, %v3690_v9  ;;  %v6628_v9 = vld [vmem:[%s8302_s5 + $0x148] sm:$0xff] }
 0x6ef   : > { %7147 = vmatpush3.msra.mxu0 %v6578_v7  ;;  %7148 = vmatprep.mubr.msk.f32.mxu0 %vm489_vm3, %v3776_v11 }
 0x6f0   : > { %7151 = vmatprep.subr.mxu0 %v6581_v10 }
 0x6f6   : > { %7149 = vmatmul.mubr.msk.f32.vlgmr.msra.gmra.mrb[8].mxu0 %vm489_vm3, %v3777_v12  ;;  %v6631_v12 = vld [vmem:[%s8302_s5 + $0x150] sm:$0xff] }
 0x6f7   : > { %7152 = vmatpush3.msra.mxu0 %v6581_v10  ;;  %7153 = vmatprep.mubr.msk.f32.mxu0 %vm489_vm3, %v3863_v14 }
 0x6f8   : > { %7156 = vmatprep.subr.mxu0 %v6584_v13 }
 0x6fe   : > { %7154 = vmatmul.mubr.msk.f32.vlgmr.msra.gmra.mrb[8].mxu0 %vm489_vm3, %v3864_v15  ;;  %v6634_v15 = vld [vmem:[%s8302_s5 + $0x158] sm:$0xff] }
 0x6ff   : > { %7157 = vmatpush3.msra.mxu0 %v6584_v13  ;;  %7158 = vmatprep.mubr.msk.f32.mxu0 %vm489_vm3, %v3950_v17 }
 0x700   : > { %7161 = vmatprep.subr.mxu0 %v6587_v16 }
 0x706   : > { %7159 = vmatmul.mubr.msk.f32.vlgmr.msra.gmra.mrb[8].mxu0 %vm489_vm3, %v3951_v18  ;;  %v6637_v18 = vld [vmem:[%s8302_s5 + $0x160] sm:$0xff] }
 0x707   : > { %7162 = vmatpush3.msra.mxu0 %v6587_v16  ;;  %7163 = vmatprep.mubr.msk.f32.mxu0 %vm489_vm3, %v4037_v20 }
 0x708   : > { %7166 = vmatprep.subr.mxu0 %v6590_v19 }
 0x70e   : > { %7164 = vmatmul.mubr.msk.f32.vlgmr.msra.gmra.mrb[8].mxu0 %vm489_vm3, %v4038_v21 }
 0x70f   : > { %7167 = vmatpush3.msra.mxu0 %v6590_v19  ;;  %7168 = vmatprep.mubr.msk.f32.mxu0 %vm489_vm3, %v4124_v23  ;;  %v6643_v23 = vld [vmem:[%s8300_s3 + $0x98] sm:$0xff] }
 0x710   : > { %7171 = vmatprep.subr.mxu0 %v6593_v22 }
 0x716   : > { %7169 = vmatmul.mubr.msk.f32.vlgmr.msra.gmra.mrb[8].mxu0 %vm489_vm3, %v4125_v24 }
 0x717   : > { %7172 = vmatpush3.msra.mxu0 %v6593_v22  ;;  %7173 = vmatprep.mubr.msk.f32.mxu0 %vm489_vm3, %v4211_v26  ;;  %v6642_v22 = vld [vmem:[%s8300_s3 + $0x90] sm:$0xff]  ;;  %v6645_v26 = vld [vmem:[%s8301_s4 + $0x88] sm:$0xff] }
 0x718   : > { %7176 = vmatprep.subr.mxu0 %v6596_v25  ;;  %v7383_v24 = vpack.c.bf16 %v6643_v23, %v6642_v22 }
 0x71e   : > { %7174 = vmatmul.mubr.msk.f32.vlgmr.msra.gmra.mrb[8].mxu0 %vm489_vm3, %v4212_v27 }
 0x71f   : > { %7177 = vmatpush3.msra.mxu0 %v6596_v25  ;;  %7178 = vmatprep.mubr.msk.f32.mxu0 %vm489_vm3, %v3603_v2  ;;  %v6625_v2 = vld [vmem:[%s8302_s5 + $0x140] sm:$0xff] }
 0x720   : > { %7380 = vmatprep.subr.bf16.mxu0 %v7379_v58  ;;  %v6644_v25 = vld [vmem:[%s8301_s4 + $0x80] sm:$0xff] }
 0x721   : > { %v7387_v27 = vpack.c.bf16 %v6645_v26, %v6644_v25 }
 0x726   : > { %7179 = vmatmul.mubr.msk.f32.vlgmr.msra.gmra.mrb[8].mxu0 %vm489_vm3, %v4299_v28  ;;  %v6610_v28 = vld [vmem:[%s8303_s6 + $0x4] ss:$0 sm:$0xff] }
 0x727   : > { %7382 = vmatpush3.bf16.msra.mxu0 %v7379_v58 }
 0x728   : > { %7384 = vmatprep.subr.bf16.mxu0 %v7383_v24 }
 0x72b   : > { %7386 = vmatpush3.bf16.msra.mxu0 %v7383_v24 }
 0x72c   : > { %7388 = vmatprep.subr.bf16.mxu0 %v7387_v27 }
 0x7f9   : > { %v7180_v36 = vpop.f32.mrb[8].mxu0 }
 0x7fa   : > { %v7401_v37 = vadd.f32 %v7180_v36, %v6569_v35  ;;  %v4374_v38 = vpop.f32.mrb[9].mxu0 }
 0x7fb   : > { %v7402_v39 = vadd.f32 %v6569_v35, %v4374_v38 }
 0x7fc   : > { %v4386_v1 = vmax.f32 %v7401_v37, 0.0 }
 0x7fd   : > { %v4385_v42 = vmax.f32 %v7402_v39, 0.0 }
 0x7fe   : > { %4388 = vst.msk [vmem:[#allocation3 + $0x9] sm:$0xff] %vm1367_vm5, %v4386_v1 }
 0x7ff   : > { %4387 = vst.msk [vmem:[#allocation3 + $0x1] sm:$0xff] %vm1367_vm5, %v4385_v42  ;;  %7189 = vmatprep.mubr.msk.f32.mxu1 %vm1367_vm5, %v4385_v42 }
 0x800   : > { %7190 = vmatmul.mubr.msk.f32.vlgmr.msra.gmra.mrb[8].mxu1 %vm1367_vm5, %v4386_v1 }
 0x801   : > { %7374 = vmatpush3.bf16.msra.mxu1 %v7371_v34  ;;  %v6647_v34 = vld [vmem:[%s8301_s4 + $0x98] sm:$0xff] }
 0x802   : > { %7376 = vmatprep.subr.bf16.mxu1 %v7375_v43  ;;  %v7391_v37 = vpack.c.bf16 %v6647_v34, %v6646_v33 }
 0x805   : > { %7378 = vmatpush3.bf16.msra.mxu1 %v7375_v43  ;;  %v4394_v49 = vld [vmem:[#allocation3 + $0xa] sm:$0xff] }
 0x806   : > { %v4389_v44 = vld [vmem:[#allocation3] sm:$0xff]  ;;  %v4390_v45 = vld [vmem:[#allocation3 + $0x8] sm:$0xff]  ;;  %7203 = vmatprep.subr.mxu1 %v6613_v54 }
 0x807   : > { %v4391_v46 = vmax.f32 %v4385_v42, %v4389_v44  ;;  %v4392_v47 = vmax.f32 %v4386_v1, %v4390_v45  ;;  %v4393_v48 = vld [vmem:[#allocation3 + $0x2] sm:$0xff]  ;;  %v6654_v45 = vld [vmem:[%s8302_s5 + $0x168] sm:$0xff] }
 0x809   : > { %v4395_v52 = vmax.f32 %v4391_v46, %v4393_v48  ;;  %v4396_v53 = vmax.f32 %v4392_v47, %v4394_v49  ;;  %v6657_v46 = vld [vmem:[%s8302_s5 + $0x170] sm:$0xff] }
 0x80b   : > { %7200 = vmatprep.mubr.msk.f32.mxu1 %vm1367_vm5, %v4395_v52 }
 0x80c   : > { %7201 = vmatmul.mubr.msk.f32.vlgmr.msra.gmra.mrb[10].mxu1 %vm1367_vm5, %v4396_v53  ;;  %v6660_v53 = vld [vmem:[%s8302_s5 + $0x178] sm:$0xff] }
 0x80d   : > { %7204 = vmatpush3.msra.mxu1 %v6613_v54 }
 0x80e   : > { %7208 = vmatprep.subr.mxu1 %v6616_v55 }
 0x8d3   : > { %v7191_v59 = vpop.f32.mrb[8].mxu1 }
 0x8d4   : > { %4489 = vst.msk [vmem:[#allocation2 + $0xc] sm:$0xff] %vm489_vm3, %v7191_v59  ;;  %v4479_v60 = vpop.f32.mrb[9].mxu1  ;;  %v6666_v59 = vld [vmem:[%s8302_s5 + $0x188] sm:$0xff] }
 0x8d5   : > { %4488 = vst.msk [vmem:[#allocation2 + $0x4] sm:$0xff] %vm489_vm3, %v4479_v60 }
 0x8db   : > { %v4928_v11 = vld [vmem:[#allocation2 + $0xc] sm:$0xff] }
 0x8dc   : > { %v4579_v61 = vld [vmem:[#allocation2] sm:$0xff]  ;;  %v4580_v62 = vld [vmem:[#allocation2 + $0x8] sm:$0xff]  ;;  %v5276_v21 = vld [vmem:[#allocation2 + $0x10] sm:$0xff] }
 0x8dd   : > { %7205 = vmatprep.mubr.msk.f32.mxu1 %vm489_vm3, %v4579_v61  ;;  %v4666_v0 = vld [vmem:[#allocation2 + $0x1] sm:$0xff]  ;;  %v4667_v3 = vld [vmem:[#allocation2 + $0x9] sm:$0xff] }
 0x8de   : > { %7206 = vmatmul.mubr.msk.f32.vlgmr.msra.gmra.mrb[10].mxu1 %vm489_vm3, %v4580_v62  ;;  %v4753_v5 = vld [vmem:[#allocation2 + $0x2] sm:$0xff]  ;;  %v4754_v6 = vld [vmem:[#allocation2 + $0xa] sm:$0xff] }
 0x8df   : > { %7209 = vmatpush3.msra.mxu1 %v6616_v55  ;;  %7210 = vmatprep.mubr.msk.f32.mxu1 %vm489_vm3, %v4666_v0  ;;  %v4840_v7 = vld [vmem:[#allocation2 + $0x3] sm:$0xff]  ;;  %v4841_v8 = vld [vmem:[#allocation2 + $0xb] sm:$0xff] }
 0x8e0   : > { %7213 = vmatprep.subr.mxu1 %v6619_v63  ;;  %v4927_v10 = vld [vmem:[#allocation2 + $0x4] sm:$0xff]  ;;  %v5015_v14 = vld [vmem:[#allocation2 + $0xd] sm:$0xff] }
 0x8e1   : > { %v5014_v13 = vld [vmem:[#allocation2 + $0x5] sm:$0xff]  ;;  %v5102_v17 = vld [vmem:[#allocation2 + $0xe] sm:$0xff] }
 0x8e2   : > { %v5101_v16 = vld [vmem:[#allocation2 + $0x6] sm:$0xff]  ;;  %v5189_v20 = vld [vmem:[#allocation2 + $0xf] sm:$0xff] }
 0x8e3   : > { %v5188_v19 = vld [vmem:[#allocation2 + $0x7] sm:$0xff] }
 0x8e6   : > { %7211 = vmatmul.mubr.msk.f32.vlgmr.msra.gmra.mrb[10].mxu1 %vm489_vm3, %v4667_v3  ;;  %v6672_v3 = vld [vmem:[%s8302_s5 + $0x198] sm:$0xff] }
 0x8e7   : > { %7214 = vmatpush3.msra.mxu1 %v6619_v63  ;;  %7215 = vmatprep.mubr.msk.f32.mxu1 %vm489_vm3, %v4753_v5 }
 0x8e8   : > { %7218 = vmatprep.subr.mxu1 %v6622_v4 }
 0x8ee   : > { %7216 = vmatmul.mubr.msk.f32.vlgmr.msra.gmra.mrb[10].mxu1 %vm489_vm3, %v4754_v6  ;;  %v6675_v6 = vld [vmem:[%s8302_s5 + $0x1a0] sm:$0xff] }
 0x8ef   : > { %7219 = vmatpush3.msra.mxu1 %v6622_v4  ;;  %7220 = vmatprep.mubr.msk.f32.mxu1 %vm489_vm3, %v4840_v7 }
 0x8f0   : > { %7223 = vmatprep.subr.mxu1 %v6625_v2 }
 0x8f6   : > { %7221 = vmatmul.mubr.msk.f32.vlgmr.msra.gmra.mrb[10].mxu1 %vm489_vm3, %v4841_v8  ;;  %v6678_v8 = vld [vmem:[%s8302_s5 + $0x1a8] sm:$0xff] }
 0x8f7   : > { %7224 = vmatpush3.msra.mxu1 %v6625_v2  ;;  %7225 = vmatprep.mubr.msk.f32.mxu1 %vm489_vm3, %v4927_v10 }
 0x8f8   : > { %7228 = vmatprep.subr.mxu1 %v6628_v9 }
 0x8fe   : > { %7226 = vmatmul.mubr.msk.f32.vlgmr.msra.gmra.mrb[10].mxu1 %vm489_vm3, %v4928_v11 }
 0x8ff   : > { %7229 = vmatpush3.msra.mxu1 %v6628_v9  ;;  %7230 = vmatprep.mubr.msk.f32.mxu1 %vm489_vm3, %v5014_v13  ;;  %v6651_v13 = vld [vmem:[%s8303_s6 + $0x5] ss:$0 sm:$0xff] }
 0x900   : > { %7233 = vmatprep.subr.mxu1 %v6631_v12 }
 0x906   : > { %7231 = vmatmul.mubr.msk.f32.vlgmr.msra.gmra.mrb[10].mxu1 %vm489_vm3, %v5015_v14 }
 0x907   : > { %7234 = vmatpush3.msra.mxu1 %v6631_v12  ;;  %7235 = vmatprep.mubr.msk.f32.mxu1 %vm489_vm3, %v5101_v16  ;;  %v6681_v12 = vld [vmem:[%s8306_s9] ss:$0 sm:$0xff] }
 0x908   : > { %7238 = vmatprep.subr.mxu1 %v6634_v15  ;;  %v6349_v14 = vmul.f32 %v6681_v12, %v8011_v50  ;;  %v6682_v16 = vld [vmem:[%s8307_s10] ss:$0 sm:$0xff] }
 0x90a   : > { %v6358_v22 = vadd.f32 %v6682_v16, %v6349_v14 }
 0x90e   : > { %7236 = vmatmul.mubr.msk.f32.vlgmr.msra.gmra.mrb[10].mxu1 %vm489_vm3, %v5102_v17  ;;  %v6348_v17 = vmul.f32 %v6681_v12, %v8013_v51 }
 0x90f   : > { %7239 = vmatpush3.msra.mxu1 %v6634_v15  ;;  %7240 = vmatprep.mubr.msk.f32.mxu1 %vm489_vm3, %v5188_v19 }
 0x910   : > { %7243 = vmatprep.subr.mxu1 %v6637_v18  ;;  %v6357_v24 = vadd.f32 %v6682_v16, %v6348_v17 }
 0x916   : > { %7241 = vmatmul.mubr.msk.f32.vlgmr.msra.gmra.mrb[10].mxu1 %vm489_vm3, %v5189_v20 }
 0x917   : > { %7244 = vmatpush3.msra.mxu1 %v6637_v18  ;;  %7245 = vmatprep.mubr.msk.f32.mxu1 %vm489_vm3, %v4580_v62  ;;  %v6669_v62 = vld [vmem:[%s8302_s5 + $0x190] sm:$0xff] }
 0x91e   : > { %7246 = vmatmul.mubr.msk.f32.vlgmr.msra.gmra.mrb[10].mxu1 %vm489_vm3, %v5276_v21 }
 0x9f1   : > { %v7247_v29 = vpop.f32.mrb[10].mxu1 }
 0x9f2   : > { %v7403_v30 = vadd.f32 %v7247_v29, %v6610_v28  ;;  %v5351_v31 = vpop.f32.mrb[11].mxu1 }
 0x9f3   : > { %v7404_v32 = vadd.f32 %v6610_v28, %v5351_v31 }
 0x9f4   : > { %v5363_v35 = vmax.f32 %v7403_v30, 0.0 }
 0x9f5   : > { %v5362_v36 = vmax.f32 %v7404_v32, 0.0 }
 0x9f6   : > { %5365 = vst.msk [vmem:[#allocation3 + $0x9] sm:$0xff] %vm1367_vm5, %v5363_v35 }
 0x9f7   : > { %5364 = vst.msk [vmem:[#allocation3 + $0x1] sm:$0xff] %vm1367_vm5, %v5362_v36  ;;  %7256 = vmatprep.mubr.msk.f32.mxu0 %vm1367_vm5, %v5362_v36 }
 0x9f8   : > { %7257 = vmatmul.mubr.msk.f32.vlgmr.msra.gmra.mrb[10].mxu0 %vm1367_vm5, %v5363_v35 }
 0x9f9   : > { %7390 = vmatpush3.bf16.msra.mxu0 %v7387_v27 }
 0x9fa   : > { %7392 = vmatprep.subr.bf16.mxu0 %v7391_v37 }
 0x9fd   : > { %7394 = vmatpush3.bf16.msra.mxu0 %v7391_v37  ;;  %v5371_v42 = vld [vmem:[#allocation3 + $0xa] sm:$0xff] }
 0x9fe   : > { %v5366_v38 = vld [vmem:[#allocation3] sm:$0xff]  ;;  %v5367_v39 = vld [vmem:[#allocation3 + $0x8] sm:$0xff]  ;;  %7270 = vmatprep.subr.mxu0 %v6654_v45 }
 0x9ff   : > { %v5368_v40 = vmax.f32 %v5362_v36, %v5366_v38  ;;  %v5369_v41 = vmax.f32 %v5363_v35, %v5367_v39  ;;  %v5370_v1 = vld [vmem:[#allocation3 + $0x2] sm:$0xff] }
 0xa01   : > { %v5372_v43 = vmax.f32 %v5368_v40, %v5370_v1  ;;  %v5373_v44 = vmax.f32 %v5369_v41, %v5371_v42 }
 0xa03   : > { %7267 = vmatprep.mubr.msk.f32.mxu0 %vm1367_vm5, %v5372_v43 }
 0xa04   : > { %7268 = vmatmul.mubr.msk.f32.vlgmr.msra.gmra.mrb[12].mxu0 %vm1367_vm5, %v5373_v44 }
 0xa05   : > { %7271 = vmatpush3.msra.mxu0 %v6654_v45 }
 0xa06   : > { %7275 = vmatprep.subr.mxu0 %v6657_v46 }
 0xacb   : > { %v7258_v47 = vpop.f32.mrb[10].mxu0 }
 0xacc   : > { %5466 = vst.msk [vmem:[#allocation2 + $0xc] sm:$0xff] %vm489_vm3, %v7258_v47  ;;  %v5456_v48 = vpop.f32.mrb[11].mxu0 }
 0xacd   : > { %5465 = vst.msk [vmem:[#allocation2 + $0x4] sm:$0xff] %vm489_vm3, %v5456_v48 }
 0xad3   : > { %v5905_v0 = vld [vmem:[#allocation2 + $0xc] sm:$0xff] }
 0xad4   : > { %v5556_v49 = vld [vmem:[#allocation2] sm:$0xff]  ;;  %v5557_v52 = vld [vmem:[#allocation2 + $0x8] sm:$0xff]  ;;  %v6253_v11 = vld [vmem:[#allocation2 + $0x10] sm:$0xff] }
 0xad5   : > { %7272 = vmatprep.mubr.msk.f32.mxu0 %vm489_vm3, %v5556_v49  ;;  %v5643_v54 = vld [vmem:[#allocation2 + $0x1] sm:$0xff]  ;;  %v5644_v55 = vld [vmem:[#allocation2 + $0x9] sm:$0xff] }
 0xad6   : > { %7273 = vmatmul.mubr.msk.f32.vlgmr.msra.gmra.mrb[12].mxu0 %vm489_vm3, %v5557_v52  ;;  %v5730_v57 = vld [vmem:[#allocation2 + $0x2] sm:$0xff]  ;;  %v5731_v58 = vld [vmem:[#allocation2 + $0xa] sm:$0xff] }
 0xad7   : > { %7276 = vmatpush3.msra.mxu0 %v6657_v46  ;;  %7277 = vmatprep.mubr.msk.f32.mxu0 %vm489_vm3, %v5643_v54  ;;  %v5817_v60 = vld [vmem:[#allocation2 + $0x3] sm:$0xff]  ;;  %v5818_v61 = vld [vmem:[#allocation2 + $0xb] sm:$0xff] }
 0xad8   : > { %7280 = vmatprep.subr.mxu0 %v6660_v53  ;;  %v5904_v63 = vld [vmem:[#allocation2 + $0x4] sm:$0xff]  ;;  %v5992_v5 = vld [vmem:[#allocation2 + $0xd] sm:$0xff] }
 0xad9   : > { %v5991_v4 = vld [vmem:[#allocation2 + $0x5] sm:$0xff]  ;;  %v6079_v7 = vld [vmem:[#allocation2 + $0xe] sm:$0xff] }
 0xada   : > { %v6078_v2 = vld [vmem:[#allocation2 + $0x6] sm:$0xff]  ;;  %v6166_v10 = vld [vmem:[#allocation2 + $0xf] sm:$0xff] }
 0xadb   : > { %v6165_v9 = vld [vmem:[#allocation2 + $0x7] sm:$0xff] }
 0xade   : > { %7278 = vmatmul.mubr.msk.f32.vlgmr.msra.gmra.mrb[12].mxu0 %vm489_vm3, %v5644_v55 }
 0xadf   : > { %7281 = vmatpush3.msra.mxu0 %v6660_v53  ;;  %7282 = vmatprep.mubr.msk.f32.mxu0 %vm489_vm3, %v5730_v57 }
 0xae0   : > { %7285 = vmatprep.subr.mxu0 %v6663_v56 }
 0xae6   : > { %7283 = vmatmul.mubr.msk.f32.vlgmr.msra.gmra.mrb[12].mxu0 %vm489_vm3, %v5731_v58 }
 0xae7   : > { %7286 = vmatpush3.msra.mxu0 %v6663_v56  ;;  %7287 = vmatprep.mubr.msk.f32.mxu0 %vm489_vm3, %v5817_v60 }
 0xae8   : > { %7290 = vmatprep.subr.mxu0 %v6666_v59 }
 0xaee   : > { %7288 = vmatmul.mubr.msk.f32.vlgmr.msra.gmra.mrb[12].mxu0 %vm489_vm3, %v5818_v61 }
 0xaef   : > { %7291 = vmatpush3.msra.mxu0 %v6666_v59  ;;  %7292 = vmatprep.mubr.msk.f32.mxu0 %vm489_vm3, %v5904_v63 }
 0xaf0   : > { %7295 = vmatprep.subr.mxu0 %v6669_v62 }
 0xaf6   : > { %7293 = vmatmul.mubr.msk.f32.vlgmr.msra.gmra.mrb[12].mxu0 %vm489_vm3, %v5905_v0 }
 0xaf7   : > { %7296 = vmatpush3.msra.mxu0 %v6669_v62  ;;  %7297 = vmatprep.mubr.msk.f32.mxu0 %vm489_vm3, %v5991_v4 }
 0xaf8   : > { %7300 = vmatprep.subr.mxu0 %v6672_v3 }
 0xafe   : > { %7298 = vmatmul.mubr.msk.f32.vlgmr.msra.gmra.mrb[12].mxu0 %vm489_vm3, %v5992_v5 }
 0xaff   : > { %7301 = vmatpush3.msra.mxu0 %v6672_v3  ;;  %7302 = vmatprep.mubr.msk.f32.mxu0 %vm489_vm3, %v6078_v2 }
 0xb00   : > { %7305 = vmatprep.subr.mxu0 %v6675_v6 }
 0xb06   : > { %7303 = vmatmul.mubr.msk.f32.vlgmr.msra.gmra.mrb[12].mxu0 %vm489_vm3, %v6079_v7 }
 0xb07   : > { %7306 = vmatpush3.msra.mxu0 %v6675_v6  ;;  %7307 = vmatprep.mubr.msk.f32.mxu0 %vm489_vm3, %v6165_v9 }
 0xb08   : > { %7310 = vmatprep.subr.mxu0 %v6678_v8 }
 0xb0e   : > { %7308 = vmatmul.mubr.msk.f32.vlgmr.msra.gmra.mrb[12].mxu0 %vm489_vm3, %v6166_v10 }
 0xb0f   : > { %7311 = vmatpush3.msra.mxu0 %v6678_v8  ;;  %7312 = vmatprep.mubr.msk.f32.mxu0 %vm489_vm3, %v5557_v52 }
 0xb16   : > { %7313 = vmatmul.mubr.msk.f32.vlgmr.msra.gmra.mrb[12].mxu0 %vm489_vm3, %v6253_v11 }
 0xbe9   : > { %v7314_v15 = vpop.f32.mrb[12].mxu0 }
 0xbea   : > { %v7405_v18 = vadd.f32 %v7314_v15, %v6651_v13  ;;  %v6328_v19 = vpop.f32.mrb[13].mxu0 }
 0xbeb   : > { %v7406_v20 = vadd.f32 %v6651_v13, %v6328_v19 }
 0xbec   : > { %v6340_v21 = vmax.f32 %v7405_v18, 0.0 }
 0xbed   : > { %v6339_v23 = vmax.f32 %v7406_v20, 0.0 }
 0xbee   : > { %v6360_v25 = vadd.f32 %v6358_v22, %v6340_v21 }
 0xbef   : > { %v6359_v50 = vadd.f32 %v6357_v24, %v6339_v23 }
 0xbf0   : > { %v6362_v26 = vmax.f32 %v6360_v25, 0.0 }
 0xbf1   : > { %v6361_v51 = vmax.f32 %v6359_v50, 0.0 }
 0xbf2   : > { %6364 = vst.msk [vmem:[%s379_s29 + $0x8] sm:$0xff] %vm1367_vm5, %v6362_v26 }
 0xbf3   : > { %6363 = vst.msk [vmem:[%s379_s29] sm:$0xff] %vm1367_vm5, %v6361_v51 }
 0xbf4   : > { %7571 = shalt.err (!%p7568_p3)
}
 0xbf5   : > { %s7572_s30 = scalar_lea.hbm %s8250_s16, 256  ;;  %s7576_s15 = scalar_lea.hbm %s8308_s11, 512 }
 0xbf6   : > { %p7573_p4 = scmp.ne.s32.totalorder %s8250_s16, %s7572_s30  ;;  %p7577_p9 = scmp.lt.u32.totalorder %s8250_s16, %s8308_s11 }
 0xbf7   : > { %p7578_p10 = scmp.lt.u32.totalorder %s7576_s15, %s7572_s30  ;;  %p7580_p12 = scmp.lt.u32.totalorder %s7572_s30, %s8250_s16 }
 0xbf8   : > { %p7574_p7 = pnand %p7573_p4, %p7724_p5 }
 0xbf9   : > { %p7579_p11 = por %p7578_p10, %p7577_p9 }
 0xbfa   : > { %p7575_p8 = pneg %p7574_p7 }
 0xbfb   : > { %p7581_p13 = por %p7580_p12, %p7579_p11 }
 0xbfd   : > { %p7582_p0 = pnand %p7581_p13, %p7575_p8 }
 0xbff   : > { %7585 = shalt.err (!%p7582_p0)
}
 0xc00   : > { %s7624_s14 = smov 128   ;;  %s7625_s25 = smov 8  }
 0xc01   : > { %7516 = dma.vmem_to_hbm [thread:$0]  (%p7724_p5), %s8252_s12, 256, %s8250_s16, %s8256_s21, %s7624_s14, %s7624_s14, %s7625_s25  }
 0xc02 PF: > { %p7522_p1 = scmp.ge.s32.totalorder %s7620_s20, 2  ;;  %s6394_s29 = sand.u32 1, %s7608_s17  }
 0xc03   : > { %s6395_s30 = scalar_lea.sflag [#allocation5], %s6394_s29 }
 0xc04   : > { %p7519_p2 = pnand %p7522_p1, %p7728_p6 }
 0xc06   : > { %7603 = dma.done.wait (!%p7519_p2), %s6395_s30, 256  }
 0xc07   : > { %7605 = vsyncadd (!%p7519_p2), %s6395_s30, 4294967040  ;;  %p21_p3 = scmp.ge.s32.totalorder %s7711_s23, 4   ;;  %s8311_s17 = smov %s7612_s18 }
 0xc08   : > { %s8312_s18 = smov %s7616_s19  ;;  %s8313_s19 = smov %s7722_s26 }
 0xc09   : > { %s8314_s20 = smov %s7711_s23  ;;  %23 = sbr.rel (!%p21_p3) target bundleno = 3 (0x3), region = 165 }
 0xc10   :  { %6400 = vsyncpa [#allocation5], 1 }
 0xc11   :  { %6402 = vsyncpa [#allocation5 + $0x1], 1 }

</bundles_post_ra>
